<compile_context>
chip_gen: v6e
topology: v6e:2x2x1
jax: 0.10.0
libtpu: 0.0.40
codegen_flags: <defaults>
</compile_context>

<pallas_src>
import math
from functools import partial

import jax
import jax.numpy as jnp
from jax import lax
from jax.experimental import pallas as pl
from jax.experimental.pallas import tpu as pltpu


# ----------------------------- in-kernel helpers -----------------------------

def _ln(z, g, b, eps):
    """Biased-variance LayerNorm over the last axis (PyTorch semantics)."""
    mu = jnp.mean(z, axis=-1, keepdims=True)
    var = jnp.mean((z - mu) ** 2, axis=-1, keepdims=True)
    return (z - mu) * lax.rsqrt(var + eps) * g + b


def _mha(q_in, kv_in, wq, bq, wkv, bkv, wo, bo, nhead):
    """Multi-head attention, weights pre-transposed to (Din, Dout); the
    1/sqrt(Dh) scale is already folded into wq/bq."""
    D = q_in.shape[-1]
    Dh = D // nhead

    q = jnp.dot(q_in, wq, preferred_element_type=jnp.float32) + bq     # (S, D)
    kv = jnp.dot(kv_in, wkv, preferred_element_type=jnp.float32) + bkv  # (M, 2D)
    k = kv[:, :D]
    v = kv[:, D:]

    outs = []
    for h in range(nhead):
        sl = slice(h * Dh, (h + 1) * Dh)
        s = lax.dot_general(q[:, sl], k[:, sl], (((1,), (1,)), ((), ())),
                            preferred_element_type=jnp.float32)         # (S, M)
        s = s - jnp.max(s, axis=-1, keepdims=True)
        p = jnp.exp(s)
        p = p * pl.reciprocal(jnp.sum(p, axis=-1, keepdims=True), approx=True)
        outs.append(jnp.dot(p, v[:, sl], preferred_element_type=jnp.float32))
    o = jnp.concatenate(outs, axis=-1)                                    # (S, D)
    return jnp.dot(o, wo, preferred_element_type=jnp.float32) + bo


# ----------------------------- fused layer kernel -----------------------------

def _decoder_layer_kernel(x_ref, m_ref,
                          sa_wq, sa_bq, sa_wkv, sa_bkv, sa_wo, sa_bo, g1, b1,
                          ca_wq, ca_bq, ca_wkv, ca_bkv, ca_wo, ca_bo, g2, b2,
                          w1, fb1, w2, fb2, g3, b3,
                          o_ref, *, nhead, eps):
    """Per-batch fused decoder layer (norm_first=False / post-norm):
         x = LN1(x + SA(x)); x = LN2(x + MHA(x, mem)); x = LN3(x + FFN(x))"""
    x = x_ref[0].astype(jnp.float32)            # (S, D)
    mem = m_ref[0].astype(jnp.float32)          # (M, D)

    # --- self-attention + residual + LayerNorm1 ---
    y = _mha(x, x, sa_wq[...], sa_bq[...], sa_wkv[...], sa_bkv[...],
             sa_wo[...], sa_bo[...], nhead)
    x = _ln(x + y, g1[...].astype(jnp.float32), b1[...].astype(jnp.float32), eps)

    # --- cross-attention + residual + LayerNorm2 ---
    y = _mha(x, mem, ca_wq[...], ca_bq[...], ca_wkv[...], ca_bkv[...],
             ca_wo[...], ca_bo[...], nhead)
    x = _ln(x + y, g2[...].astype(jnp.float32), b2[...].astype(jnp.float32), eps)

    # --- FFN (relu) + residual + LayerNorm3 ---
    h = jnp.dot(x, w1[...], preferred_element_type=jnp.float32) + fb1[...]
    h = jnp.maximum(h, 0.0)
    y = jnp.dot(h, w2[...], preferred_element_type=jnp.float32) + fb2[...]
    x = _ln(x + y, g3[...].astype(jnp.float32), b3[...].astype(jnp.float32), eps)

    o_ref[0] = x.astype(o_ref.dtype)


# --------------------------- module-level forward ---------------------------

def opacus_decoder_layer(tgt, memory, params, *, nhead, eps=1e-5):
    """tgt: (S, B, D), memory: (M, B, D) -> (S, B, D). Post-norm path."""
    S, B, D = tgt.shape
    M = memory.shape[0]
    F = params["w1"].shape[0]
    scale = 1.0 / math.sqrt(D // nhead)

    def attn_args(p):
        wq_t = (p["wq"] * scale).T                                   # (D, D)
        bq = (p["bq"] * scale).reshape(1, D)
        wkv_t = jnp.concatenate([p["wk"].T, p["wv"].T], axis=1)      # (D, 2D)
        bkv = jnp.concatenate([p["bk"], p["bv"]]).reshape(1, 2 * D)
        return (wq_t, bq, wkv_t, bkv, p["wo"].T, p["bo"].reshape(1, D))

    vec = lambda v: v.reshape(1, -1)

    # Batch-major layout so per-batch blocks are selected via BlockSpec index_maps.
    x_b = jnp.transpose(tgt, (1, 0, 2))        # (B, S, D)
    mem_b = jnp.transpose(memory, (1, 0, 2))   # (B, M, D)

    sa = attn_args(params["self_attn"])
    ca = attn_args(params["cross_attn"])

    args = (x_b, mem_b,
            *sa, vec(params["ln1_g"]), vec(params["ln1_b"]),
            *ca, vec(params["ln2_g"]), vec(params["ln2_b"]),
            params["w1"].T, vec(params["b1"]),
            params["w2"].T, vec(params["b2"]),
            vec(params["ln3_g"]), vec(params["ln3_b"]))

    def full(shape):
        return pl.BlockSpec(shape, lambda b, _s=len(shape): (0,) * _s)

    attn_specs = [full((D, D)), full((1, D)), full((D, 2 * D)), full((1, 2 * D)),
                  full((D, D)), full((1, D))]
    ln_specs = [full((1, D)), full((1, D))]

    in_specs = ([pl.BlockSpec((1, S, D), lambda b: (b, 0, 0)),
                 pl.BlockSpec((1, M, D), lambda b: (b, 0, 0))]
                + attn_specs + ln_specs
                + attn_specs + ln_specs
                + [full((D, F)), full((1, F)), full((F, D)), full((1, D))]
                + ln_specs)

    # TODO(synk): for production sizes (D, F >= 1024/4096) the resident weight set
    # exceeds v7x's 64 MiB VMEM; split the FFN into a K-tiled reduction grid axis
    # with an accumulator scratch (and/or un-fuse the two attention blocks).
    out_b = pl.pallas_call(
        partial(_decoder_layer_kernel, nhead=nhead, eps=eps),
        out_shape=jax.ShapeDtypeStruct((B, S, D), tgt.dtype),
        grid=(B,),
        in_specs=in_specs,
        out_specs=pl.BlockSpec((1, S, D), lambda b: (b, 0, 0)),
        compiler_params=pltpu.CompilerParams(dimension_semantics=("parallel",)),
    )(*args)

    return jnp.transpose(out_b, (1, 0, 2))     # back to (S, B, D)


# ------------------------------ pure-JAX reference ------------------------------

def _ref_mha(q_in, k_in, v_in, p, nhead):
    S, B, D = q_in.shape
    M = k_in.shape[0]
    Dh = D // nhead
    q = q_in @ p["wq"].T + p["bq"]
    k = k_in @ p["wk"].T + p["bk"]
    v = v_in @ p["wv"].T + p["bv"]
    q = q.reshape(S, B, nhead, Dh).transpose(1, 2, 0, 3)
    k = k.reshape(M, B, nhead, Dh).transpose(1, 2, 0, 3)
    v = v.reshape(M, B, nhead, Dh).transpose(1, 2, 0, 3)
    s = jnp.einsum("bhsd,bhmd->bhsm", q, k,
                   precision=jax.lax.Precision.HIGHEST) / math.sqrt(Dh)
    p_ = jax.nn.softmax(s, axis=-1)
    o = jnp.einsum("bhsm,bhmd->bhsd", p_, v, precision=jax.lax.Precision.HIGHEST)
    o = o.transpose(2, 0, 1, 3).reshape(S, B, D)
    return o @ p["wo"].T + p["bo"]


def _ref_ln(x, g, b, eps):
    mu = jnp.mean(x, axis=-1, keepdims=True)
    var = jnp.mean((x - mu) ** 2, axis=-1, keepdims=True)
    return (x - mu) * jax.lax.rsqrt(var + eps) * g + b


def ref_decoder_layer(tgt, memory, params, *, nhead, eps=1e-5):
    x = tgt
    x = _ref_ln(x + _ref_mha(x, x, x, params["self_attn"], nhead),
                params["ln1_g"], params["ln1_b"], eps)
    x = _ref_ln(x + _ref_mha(x, memory, memory, params["cross_attn"], nhead),
                params["ln2_g"], params["ln2_b"], eps)
    h = jnp.maximum(x @ params["w1"].T + params["b1"], 0.0)
    ff = h @ params["w2"].T + params["b2"]
    x = _ref_ln(x + ff, params["ln3_g"], params["ln3_b"], eps)
    return x


# ------------------------------------ main ------------------------------------

def _attn_params(key, d_model):
    ks = jax.random.split(key, 8)
    s = 0.05
    return {
        "wq": s * jax.random.normal(ks[0], (d_model, d_model), jnp.float32),
        "bq": s * jax.random.normal(ks[1], (d_model,), jnp.float32),
        "wk": s * jax.random.normal(ks[2], (d_model, d_model), jnp.float32),
        "bk": s * jax.random.normal(ks[3], (d_model,), jnp.float32),
        "wv": s * jax.random.normal(ks[4], (d_model, d_model), jnp.float32),
        "bv": s * jax.random.normal(ks[5], (d_model,), jnp.float32),
        "wo": s * jax.random.normal(ks[6], (d_model, d_model), jnp.float32),
        "bo": s * jax.random.normal(ks[7], (d_model,), jnp.float32),
    }


if __name__ == "__main__":
    d_model, nhead, dim_ff = 32, 4, 64
    S, M, B = 8, 8, 2

    root = jax.random.PRNGKey(0)
    k_tgt, k_mem, k_sa, k_ca, k_w1, k_b1, k_w2, k_b2, k_ln = jax.random.split(root, 9)

    tgt = jax.random.normal(k_tgt, (S, B, d_model), jnp.float32)
    memory = jax.random.normal(k_mem, (M, B, d_model), jnp.float32)

    kg1, kb1, kg2, kb2, kg3, kb3 = jax.random.split(k_ln, 6)
    params = {
        "self_attn": _attn_params(k_sa, d_model),
        "cross_attn": _attn_params(k_ca, d_model),
        "w1": 0.05 * jax.random.normal(k_w1, (dim_ff, d_model), jnp.float32),
        "b1": 0.05 * jax.random.normal(k_b1, (dim_ff,), jnp.float32),
        "w2": 0.05 * jax.random.normal(k_w2, (d_model, dim_ff), jnp.float32),
        "b2": 0.05 * jax.random.normal(k_b2, (d_model,), jnp.float32),
        "ln1_g": 1.0 + 0.05 * jax.random.normal(kg1, (d_model,), jnp.float32),
        "ln1_b": 0.05 * jax.random.normal(kb1, (d_model,), jnp.float32),
        "ln2_g": 1.0 + 0.05 * jax.random.normal(kg2, (d_model,), jnp.float32),
        "ln2_b": 0.05 * jax.random.normal(kb2, (d_model,), jnp.float32),
        "ln3_g": 1.0 + 0.05 * jax.random.normal(kg3, (d_model,), jnp.float32),
        "ln3_b": 0.05 * jax.random.normal(kb3, (d_model,), jnp.float32),
    }

    out = opacus_decoder_layer(tgt, memory, params, nhead=nhead)
    out = jax.block_until_ready(out)

    ref = jax.block_until_ready(ref_decoder_layer(tgt, memory, params, nhead=nhead))
    assert out.shape == (S, B, d_model)
    assert jnp.allclose(out, ref, atol=2e-2, rtol=2e-2), float(jnp.max(jnp.abs(out - ref)))

    print("KERNEL_OK")
</pallas_src>

<mosaic_0001>
module attributes {stable_mosaic.version = 11 : i64} {
  func.func @_decoder_layer_kernel(%arg0: i32, %arg1: memref<1x8x32xf32, #tpu.memory_space<vmem>>, %arg2: memref<1x8x32xf32, #tpu.memory_space<vmem>>, %arg3: memref<32x32xf32, #tpu.memory_space<vmem>>, %arg4: memref<1x32xf32, #tpu.memory_space<vmem>>, %arg5: memref<32x64xf32, #tpu.memory_space<vmem>>, %arg6: memref<1x64xf32, #tpu.memory_space<vmem>>, %arg7: memref<32x32xf32, #tpu.memory_space<vmem>>, %arg8: memref<1x32xf32, #tpu.memory_space<vmem>>, %arg9: memref<1x32xf32, #tpu.memory_space<vmem>>, %arg10: memref<1x32xf32, #tpu.memory_space<vmem>>, %arg11: memref<32x32xf32, #tpu.memory_space<vmem>>, %arg12: memref<1x32xf32, #tpu.memory_space<vmem>>, %arg13: memref<32x64xf32, #tpu.memory_space<vmem>>, %arg14: memref<1x64xf32, #tpu.memory_space<vmem>>, %arg15: memref<32x32xf32, #tpu.memory_space<vmem>>, %arg16: memref<1x32xf32, #tpu.memory_space<vmem>>, %arg17: memref<1x32xf32, #tpu.memory_space<vmem>>, %arg18: memref<1x32xf32, #tpu.memory_space<vmem>>, %arg19: memref<32x64xf32, #tpu.memory_space<vmem>>, %arg20: memref<1x64xf32, #tpu.memory_space<vmem>>, %arg21: memref<64x32xf32, #tpu.memory_space<vmem>>, %arg22: memref<1x32xf32, #tpu.memory_space<vmem>>, %arg23: memref<1x32xf32, #tpu.memory_space<vmem>>, %arg24: memref<1x32xf32, #tpu.memory_space<vmem>>, %arg25: memref<1x8x32xf32, #tpu.memory_space<vmem>>) attributes {dimension_semantics = [#tpu.dimension_semantics<parallel>], iteration_bounds = array<i64: 2>, scalar_prefetch = 0 : i64, scratch_operands = 0 : i64, tpu.core_type = #tpu.core_type<tc>, window_params = [{transform_indices = @transform_0, window_bounds = array<i64: 1, 8, 32>}, {transform_indices = @transform_1, window_bounds = array<i64: 1, 8, 32>}, {pipeline_mode = #tpu.pipeline_mode<synchronous>, transform_indices = @transform_2, window_bounds = array<i64: 32, 32>}, {pipeline_mode = #tpu.pipeline_mode<synchronous>, transform_indices = @transform_3, window_bounds = array<i64: 1, 32>}, {pipeline_mode = #tpu.pipeline_mode<synchronous>, transform_indices = @transform_4, window_bounds = array<i64: 32, 64>}, {pipeline_mode = #tpu.pipeline_mode<synchronous>, transform_indices = @transform_5, window_bounds = array<i64: 1, 64>}, {pipeline_mode = #tpu.pipeline_mode<synchronous>, transform_indices = @transform_6, window_bounds = array<i64: 32, 32>}, {pipeline_mode = #tpu.pipeline_mode<synchronous>, transform_indices = @transform_7, window_bounds = array<i64: 1, 32>}, {pipeline_mode = #tpu.pipeline_mode<synchronous>, transform_indices = @transform_8, window_bounds = array<i64: 1, 32>}, {pipeline_mode = #tpu.pipeline_mode<synchronous>, transform_indices = @transform_9, window_bounds = array<i64: 1, 32>}, {pipeline_mode = #tpu.pipeline_mode<synchronous>, transform_indices = @transform_10, window_bounds = array<i64: 32, 32>}, {pipeline_mode = #tpu.pipeline_mode<synchronous>, transform_indices = @transform_11, window_bounds = array<i64: 1, 32>}, {pipeline_mode = #tpu.pipeline_mode<synchronous>, transform_indices = @transform_12, window_bounds = array<i64: 32, 64>}, {pipeline_mode = #tpu.pipeline_mode<synchronous>, transform_indices = @transform_13, window_bounds = array<i64: 1, 64>}, {pipeline_mode = #tpu.pipeline_mode<synchronous>, transform_indices = @transform_14, window_bounds = array<i64: 32, 32>}, {pipeline_mode = #tpu.pipeline_mode<synchronous>, transform_indices = @transform_15, window_bounds = array<i64: 1, 32>}, {pipeline_mode = #tpu.pipeline_mode<synchronous>, transform_indices = @transform_16, window_bounds = array<i64: 1, 32>}, {pipeline_mode = #tpu.pipeline_mode<synchronous>, transform_indices = @transform_17, window_bounds = array<i64: 1, 32>}, {pipeline_mode = #tpu.pipeline_mode<synchronous>, transform_indices = @transform_18, window_bounds = array<i64: 32, 64>}, {pipeline_mode = #tpu.pipeline_mode<synchronous>, transform_indices = @transform_19, window_bounds = array<i64: 1, 64>}, {pipeline_mode = #tpu.pipeline_mode<synchronous>, transform_indices = @transform_20, window_bounds = array<i64: 64, 32>}, {pipeline_mode = #tpu.pipeline_mode<synchronous>, transform_indices = @transform_21, window_bounds = array<i64: 1, 32>}, {pipeline_mode = #tpu.pipeline_mode<synchronous>, transform_indices = @transform_22, window_bounds = array<i64: 1, 32>}, {pipeline_mode = #tpu.pipeline_mode<synchronous>, transform_indices = @transform_23, window_bounds = array<i64: 1, 32>}, {transform_indices = @transform_24, window_bounds = array<i64: 1, 8, 32>}]} {
    %c0 = arith.constant 0 : index
    %c0_0 = arith.constant 0 : index
    %c0_1 = arith.constant 0 : index
    %0 = vector.load %arg1[%c0, %c0_0, %c0_1] : memref<1x8x32xf32, #tpu.memory_space<vmem>>, vector<1x8x32xf32>
    %1 = vector.shape_cast %0 : vector<1x8x32xf32> to vector<8x32xf32>
    %c0_2 = arith.constant 0 : index
    %c0_3 = arith.constant 0 : index
    %c0_4 = arith.constant 0 : index
    %2 = vector.load %arg2[%c0_2, %c0_3, %c0_4] : memref<1x8x32xf32, #tpu.memory_space<vmem>>, vector<1x8x32xf32>
    %3 = vector.shape_cast %2 : vector<1x8x32xf32> to vector<8x32xf32>
    %c0_5 = arith.constant 0 : index
    %c0_6 = arith.constant 0 : index
    %4 = vector.load %arg3[%c0_5, %c0_6] : memref<32x32xf32, #tpu.memory_space<vmem>>, vector<32x32xf32>
    %c0_7 = arith.constant 0 : index
    %c0_8 = arith.constant 0 : index
    %5 = vector.load %arg4[%c0_7, %c0_8] : memref<1x32xf32, #tpu.memory_space<vmem>>, vector<1x32xf32>
    %c0_9 = arith.constant 0 : index
    %c0_10 = arith.constant 0 : index
    %6 = vector.load %arg5[%c0_9, %c0_10] : memref<32x64xf32, #tpu.memory_space<vmem>>, vector<32x64xf32>
    %c0_11 = arith.constant 0 : index
    %c0_12 = arith.constant 0 : index
    %7 = vector.load %arg6[%c0_11, %c0_12] : memref<1x64xf32, #tpu.memory_space<vmem>>, vector<1x64xf32>
    %c0_13 = arith.constant 0 : index
    %c0_14 = arith.constant 0 : index
    %8 = vector.load %arg7[%c0_13, %c0_14] : memref<32x32xf32, #tpu.memory_space<vmem>>, vector<32x32xf32>
    %c0_15 = arith.constant 0 : index
    %c0_16 = arith.constant 0 : index
    %9 = vector.load %arg8[%c0_15, %c0_16] : memref<1x32xf32, #tpu.memory_space<vmem>>, vector<1x32xf32>
    %cst = arith.constant dense<0.000000e+00> : vector<8x32xf32>
    %10 = tpu.matmul %1, %4, %cst {dimension_numbers = #tpu.dot_dimension_numbers<[1], [0], [0], [1], [0, 0, 1, 1], [], []>} : vector<8x32xf32>, vector<32x32xf32>, vector<8x32xf32> -> vector<8x32xf32>
    %11 = vector.broadcast %5 : vector<1x32xf32> to vector<8x32xf32>
    %12 = arith.addf %10, %11 : vector<8x32xf32>
    %cst_17 = arith.constant dense<0.000000e+00> : vector<8x64xf32>
    %13 = tpu.matmul %1, %6, %cst_17 {dimension_numbers = #tpu.dot_dimension_numbers<[1], [0], [0], [1], [0, 0, 1, 1], [], []>} : vector<8x32xf32>, vector<32x64xf32>, vector<8x64xf32> -> vector<8x64xf32>
    %14 = vector.broadcast %7 : vector<1x64xf32> to vector<8x64xf32>
    %15 = arith.addf %13, %14 : vector<8x64xf32>
    %16 = vector.extract_strided_slice %15 {offsets = [0, 0], sizes = [8, 32], strides = [1, 1]} : vector<8x64xf32> to vector<8x32xf32>
    %17 = vector.extract_strided_slice %15 {offsets = [0, 32], sizes = [8, 32], strides = [1, 1]} : vector<8x64xf32> to vector<8x32xf32>
    %18 = vector.extract_strided_slice %12 {offsets = [0, 0], sizes = [8, 8], strides = [1, 1]} : vector<8x32xf32> to vector<8x8xf32>
    %19 = vector.extract_strided_slice %16 {offsets = [0, 0], sizes = [8, 8], strides = [1, 1]} : vector<8x32xf32> to vector<8x8xf32>
    %cst_18 = arith.constant dense<0.000000e+00> : vector<8x8xf32>
    %20 = tpu.matmul %18, %19, %cst_18 {dimension_numbers = #tpu.dot_dimension_numbers<[1], [1], [0], [0], [0, 0, 1, 0], [], []>} : vector<8x8xf32>, vector<8x8xf32>, vector<8x8xf32> -> vector<8x8xf32>
    %cst_19 = arith.constant dense<0xFF800000> : vector<8xf32>
    %21 = vector.multi_reduction <maximumf>, %20, %cst_19 [1] : vector<8x8xf32> to vector<8xf32>
    %22 = vector.shape_cast %21 : vector<8xf32> to vector<8x1xf32>
    %23 = vector.broadcast %22 : vector<8x1xf32> to vector<8x8xf32>
    %24 = arith.subf %20, %23 : vector<8x8xf32>
    %25 = math.exp %24 : vector<8x8xf32>
    %cst_20 = arith.constant dense<0.000000e+00> : vector<8xf32>
    %26 = vector.multi_reduction <add>, %25, %cst_20 [1] : vector<8x8xf32> to vector<8xf32>
    %27 = vector.shape_cast %26 : vector<8xf32> to vector<8x1xf32>
    %28 = tpu.reciprocal %27 {approx = true} : vector<8x1xf32> -> vector<8x1xf32>
    %29 = vector.broadcast %28 : vector<8x1xf32> to vector<8x8xf32>
    %30 = arith.mulf %25, %29 : vector<8x8xf32>
    %31 = vector.extract_strided_slice %17 {offsets = [0, 0], sizes = [8, 8], strides = [1, 1]} : vector<8x32xf32> to vector<8x8xf32>
    %cst_21 = arith.constant dense<0.000000e+00> : vector<8x8xf32>
    %32 = tpu.matmul %30, %31, %cst_21 {dimension_numbers = #tpu.dot_dimension_numbers<[1], [0], [0], [1], [0, 0, 1, 1], [], []>} : vector<8x8xf32>, vector<8x8xf32>, vector<8x8xf32> -> vector<8x8xf32>
    %33 = vector.extract_strided_slice %12 {offsets = [0, 8], sizes = [8, 8], strides = [1, 1]} : vector<8x32xf32> to vector<8x8xf32>
    %34 = vector.extract_strided_slice %16 {offsets = [0, 8], sizes = [8, 8], strides = [1, 1]} : vector<8x32xf32> to vector<8x8xf32>
    %cst_22 = arith.constant dense<0.000000e+00> : vector<8x8xf32>
    %35 = tpu.matmul %33, %34, %cst_22 {dimension_numbers = #tpu.dot_dimension_numbers<[1], [1], [0], [0], [0, 0, 1, 0], [], []>} : vector<8x8xf32>, vector<8x8xf32>, vector<8x8xf32> -> vector<8x8xf32>
    %cst_23 = arith.constant dense<0xFF800000> : vector<8xf32>
    %36 = vector.multi_reduction <maximumf>, %35, %cst_23 [1] : vector<8x8xf32> to vector<8xf32>
    %37 = vector.shape_cast %36 : vector<8xf32> to vector<8x1xf32>
    %38 = vector.broadcast %37 : vector<8x1xf32> to vector<8x8xf32>
    %39 = arith.subf %35, %38 : vector<8x8xf32>
    %40 = math.exp %39 : vector<8x8xf32>
    %cst_24 = arith.constant dense<0.000000e+00> : vector<8xf32>
    %41 = vector.multi_reduction <add>, %40, %cst_24 [1] : vector<8x8xf32> to vector<8xf32>
    %42 = vector.shape_cast %41 : vector<8xf32> to vector<8x1xf32>
    %43 = tpu.reciprocal %42 {approx = true} : vector<8x1xf32> -> vector<8x1xf32>
    %44 = vector.broadcast %43 : vector<8x1xf32> to vector<8x8xf32>
    %45 = arith.mulf %40, %44 : vector<8x8xf32>
    %46 = vector.extract_strided_slice %17 {offsets = [0, 8], sizes = [8, 8], strides = [1, 1]} : vector<8x32xf32> to vector<8x8xf32>
    %cst_25 = arith.constant dense<0.000000e+00> : vector<8x8xf32>
    %47 = tpu.matmul %45, %46, %cst_25 {dimension_numbers = #tpu.dot_dimension_numbers<[1], [0], [0], [1], [0, 0, 1, 1], [], []>} : vector<8x8xf32>, vector<8x8xf32>, vector<8x8xf32> -> vector<8x8xf32>
    %48 = vector.extract_strided_slice %12 {offsets = [0, 16], sizes = [8, 8], strides = [1, 1]} : vector<8x32xf32> to vector<8x8xf32>
    %49 = vector.extract_strided_slice %16 {offsets = [0, 16], sizes = [8, 8], strides = [1, 1]} : vector<8x32xf32> to vector<8x8xf32>
    %cst_26 = arith.constant dense<0.000000e+00> : vector<8x8xf32>
    %50 = tpu.matmul %48, %49, %cst_26 {dimension_numbers = #tpu.dot_dimension_numbers<[1], [1], [0], [0], [0, 0, 1, 0], [], []>} : vector<8x8xf32>, vector<8x8xf32>, vector<8x8xf32> -> vector<8x8xf32>
    %cst_27 = arith.constant dense<0xFF800000> : vector<8xf32>
    %51 = vector.multi_reduction <maximumf>, %50, %cst_27 [1] : vector<8x8xf32> to vector<8xf32>
    %52 = vector.shape_cast %51 : vector<8xf32> to vector<8x1xf32>
    %53 = vector.broadcast %52 : vector<8x1xf32> to vector<8x8xf32>
    %54 = arith.subf %50, %53 : vector<8x8xf32>
    %55 = math.exp %54 : vector<8x8xf32>
    %cst_28 = arith.constant dense<0.000000e+00> : vector<8xf32>
    %56 = vector.multi_reduction <add>, %55, %cst_28 [1] : vector<8x8xf32> to vector<8xf32>
    %57 = vector.shape_cast %56 : vector<8xf32> to vector<8x1xf32>
    %58 = tpu.reciprocal %57 {approx = true} : vector<8x1xf32> -> vector<8x1xf32>
    %59 = vector.broadcast %58 : vector<8x1xf32> to vector<8x8xf32>
    %60 = arith.mulf %55, %59 : vector<8x8xf32>
    %61 = vector.extract_strided_slice %17 {offsets = [0, 16], sizes = [8, 8], strides = [1, 1]} : vector<8x32xf32> to vector<8x8xf32>
    %cst_29 = arith.constant dense<0.000000e+00> : vector<8x8xf32>
    %62 = tpu.matmul %60, %61, %cst_29 {dimension_numbers = #tpu.dot_dimension_numbers<[1], [0], [0], [1], [0, 0, 1, 1], [], []>} : vector<8x8xf32>, vector<8x8xf32>, vector<8x8xf32> -> vector<8x8xf32>
    %63 = vector.extract_strided_slice %12 {offsets = [0, 24], sizes = [8, 8], strides = [1, 1]} : vector<8x32xf32> to vector<8x8xf32>
    %64 = vector.extract_strided_slice %16 {offsets = [0, 24], sizes = [8, 8], strides = [1, 1]} : vector<8x32xf32> to vector<8x8xf32>
    %cst_30 = arith.constant dense<0.000000e+00> : vector<8x8xf32>
    %65 = tpu.matmul %63, %64, %cst_30 {dimension_numbers = #tpu.dot_dimension_numbers<[1], [1], [0], [0], [0, 0, 1, 0], [], []>} : vector<8x8xf32>, vector<8x8xf32>, vector<8x8xf32> -> vector<8x8xf32>
    %cst_31 = arith.constant dense<0xFF800000> : vector<8xf32>
    %66 = vector.multi_reduction <maximumf>, %65, %cst_31 [1] : vector<8x8xf32> to vector<8xf32>
    %67 = vector.shape_cast %66 : vector<8xf32> to vector<8x1xf32>
    %68 = vector.broadcast %67 : vector<8x1xf32> to vector<8x8xf32>
    %69 = arith.subf %65, %68 : vector<8x8xf32>
    %70 = math.exp %69 : vector<8x8xf32>
    %cst_32 = arith.constant dense<0.000000e+00> : vector<8xf32>
    %71 = vector.multi_reduction <add>, %70, %cst_32 [1] : vector<8x8xf32> to vector<8xf32>
    %72 = vector.shape_cast %71 : vector<8xf32> to vector<8x1xf32>
    %73 = tpu.reciprocal %72 {approx = true} : vector<8x1xf32> -> vector<8x1xf32>
    %74 = vector.broadcast %73 : vector<8x1xf32> to vector<8x8xf32>
    %75 = arith.mulf %70, %74 : vector<8x8xf32>
    %76 = vector.extract_strided_slice %17 {offsets = [0, 24], sizes = [8, 8], strides = [1, 1]} : vector<8x32xf32> to vector<8x8xf32>
    %cst_33 = arith.constant dense<0.000000e+00> : vector<8x8xf32>
    %77 = tpu.matmul %75, %76, %cst_33 {dimension_numbers = #tpu.dot_dimension_numbers<[1], [0], [0], [1], [0, 0, 1, 1], [], []>} : vector<8x8xf32>, vector<8x8xf32>, vector<8x8xf32> -> vector<8x8xf32>
    %78 = tpu.concatenate %32, %47, %62, %77 in 1 : vector<8x8xf32>, vector<8x8xf32>, vector<8x8xf32>, vector<8x8xf32> -> vector<8x32xf32>
    %cst_34 = arith.constant dense<0.000000e+00> : vector<8x32xf32>
    %79 = tpu.matmul %78, %8, %cst_34 {dimension_numbers = #tpu.dot_dimension_numbers<[1], [0], [0], [1], [0, 0, 1, 1], [], []>} : vector<8x32xf32>, vector<32x32xf32>, vector<8x32xf32> -> vector<8x32xf32>
    %80 = vector.broadcast %9 : vector<1x32xf32> to vector<8x32xf32>
    %81 = arith.addf %79, %80 : vector<8x32xf32>
    %82 = arith.addf %1, %81 : vector<8x32xf32>
    %c0_35 = arith.constant 0 : index
    %c0_36 = arith.constant 0 : index
    %83 = vector.load %arg9[%c0_35, %c0_36] : memref<1x32xf32, #tpu.memory_space<vmem>>, vector<1x32xf32>
    %c0_37 = arith.constant 0 : index
    %c0_38 = arith.constant 0 : index
    %84 = vector.load %arg10[%c0_37, %c0_38] : memref<1x32xf32, #tpu.memory_space<vmem>>, vector<1x32xf32>
    %cst_39 = arith.constant dense<0.000000e+00> : vector<8xf32>
    %85 = vector.multi_reduction <add>, %82, %cst_39 [1] : vector<8x32xf32> to vector<8xf32>
    %86 = vector.shape_cast %85 : vector<8xf32> to vector<8x1xf32>
    %cst_40 = arith.constant 3.200000e+01 : f32
    %87 = vector.broadcast %cst_40 : f32 to vector<8x1xf32>
    %88 = arith.divf %86, %87 : vector<8x1xf32>
    %89 = vector.broadcast %88 : vector<8x1xf32> to vector<8x32xf32>
    %90 = arith.subf %82, %89 : vector<8x32xf32>
    %91 = arith.mulf %90, %90 : vector<8x32xf32>
    %cst_41 = arith.constant dense<0.000000e+00> : vector<8xf32>
    %92 = vector.multi_reduction <add>, %91, %cst_41 [1] : vector<8x32xf32> to vector<8xf32>
    %93 = vector.shape_cast %92 : vector<8xf32> to vector<8x1xf32>
    %cst_42 = arith.constant 3.200000e+01 : f32
    %94 = vector.broadcast %cst_42 : f32 to vector<8x1xf32>
    %95 = arith.divf %93, %94 : vector<8x1xf32>
    %96 = vector.broadcast %88 : vector<8x1xf32> to vector<8x32xf32>
    %97 = arith.subf %82, %96 : vector<8x32xf32>
    %cst_43 = arith.constant 9.99999974E-6 : f32
    %98 = vector.broadcast %cst_43 : f32 to vector<8x1xf32>
    %99 = arith.addf %95, %98 : vector<8x1xf32>
    %100 = math.rsqrt %99 : vector<8x1xf32>
    %101 = vector.broadcast %100 : vector<8x1xf32> to vector<8x32xf32>
    %102 = arith.mulf %97, %101 : vector<8x32xf32>
    %103 = vector.broadcast %83 : vector<1x32xf32> to vector<8x32xf32>
    %104 = arith.mulf %102, %103 : vector<8x32xf32>
    %105 = vector.broadcast %84 : vector<1x32xf32> to vector<8x32xf32>
    %106 = arith.addf %104, %105 : vector<8x32xf32>
    %c0_44 = arith.constant 0 : index
    %c0_45 = arith.constant 0 : index
    %107 = vector.load %arg11[%c0_44, %c0_45] : memref<32x32xf32, #tpu.memory_space<vmem>>, vector<32x32xf32>
    %c0_46 = arith.constant 0 : index
    %c0_47 = arith.constant 0 : index
    %108 = vector.load %arg12[%c0_46, %c0_47] : memref<1x32xf32, #tpu.memory_space<vmem>>, vector<1x32xf32>
    %c0_48 = arith.constant 0 : index
    %c0_49 = arith.constant 0 : index
    %109 = vector.load %arg13[%c0_48, %c0_49] : memref<32x64xf32, #tpu.memory_space<vmem>>, vector<32x64xf32>
    %c0_50 = arith.constant 0 : index
    %c0_51 = arith.constant 0 : index
    %110 = vector.load %arg14[%c0_50, %c0_51] : memref<1x64xf32, #tpu.memory_space<vmem>>, vector<1x64xf32>
    %c0_52 = arith.constant 0 : index
    %c0_53 = arith.constant 0 : index
    %111 = vector.load %arg15[%c0_52, %c0_53] : memref<32x32xf32, #tpu.memory_space<vmem>>, vector<32x32xf32>
    %c0_54 = arith.constant 0 : index
    %c0_55 = arith.constant 0 : index
    %112 = vector.load %arg16[%c0_54, %c0_55] : memref<1x32xf32, #tpu.memory_space<vmem>>, vector<1x32xf32>
    %cst_56 = arith.constant dense<0.000000e+00> : vector<8x32xf32>
    %113 = tpu.matmul %106, %107, %cst_56 {dimension_numbers = #tpu.dot_dimension_numbers<[1], [0], [0], [1], [0, 0, 1, 1], [], []>} : vector<8x32xf32>, vector<32x32xf32>, vector<8x32xf32> -> vector<8x32xf32>
    %114 = vector.broadcast %108 : vector<1x32xf32> to vector<8x32xf32>
    %115 = arith.addf %113, %114 : vector<8x32xf32>
    %cst_57 = arith.constant dense<0.000000e+00> : vector<8x64xf32>
    %116 = tpu.matmul %3, %109, %cst_57 {dimension_numbers = #tpu.dot_dimension_numbers<[1], [0], [0], [1], [0, 0, 1, 1], [], []>} : vector<8x32xf32>, vector<32x64xf32>, vector<8x64xf32> -> vector<8x64xf32>
    %117 = vector.broadcast %110 : vector<1x64xf32> to vector<8x64xf32>
    %118 = arith.addf %116, %117 : vector<8x64xf32>
    %119 = vector.extract_strided_slice %118 {offsets = [0, 0], sizes = [8, 32], strides = [1, 1]} : vector<8x64xf32> to vector<8x32xf32>
    %120 = vector.extract_strided_slice %118 {offsets = [0, 32], sizes = [8, 32], strides = [1, 1]} : vector<8x64xf32> to vector<8x32xf32>
    %121 = vector.extract_strided_slice %115 {offsets = [0, 0], sizes = [8, 8], strides = [1, 1]} : vector<8x32xf32> to vector<8x8xf32>
    %122 = vector.extract_strided_slice %119 {offsets = [0, 0], sizes = [8, 8], strides = [1, 1]} : vector<8x32xf32> to vector<8x8xf32>
    %cst_58 = arith.constant dense<0.000000e+00> : vector<8x8xf32>
    %123 = tpu.matmul %121, %122, %cst_58 {dimension_numbers = #tpu.dot_dimension_numbers<[1], [1], [0], [0], [0, 0, 1, 0], [], []>} : vector<8x8xf32>, vector<8x8xf32>, vector<8x8xf32> -> vector<8x8xf32>
    %cst_59 = arith.constant dense<0xFF800000> : vector<8xf32>
    %124 = vector.multi_reduction <maximumf>, %123, %cst_59 [1] : vector<8x8xf32> to vector<8xf32>
    %125 = vector.shape_cast %124 : vector<8xf32> to vector<8x1xf32>
    %126 = vector.broadcast %125 : vector<8x1xf32> to vector<8x8xf32>
    %127 = arith.subf %123, %126 : vector<8x8xf32>
    %128 = math.exp %127 : vector<8x8xf32>
    %cst_60 = arith.constant dense<0.000000e+00> : vector<8xf32>
    %129 = vector.multi_reduction <add>, %128, %cst_60 [1] : vector<8x8xf32> to vector<8xf32>
    %130 = vector.shape_cast %129 : vector<8xf32> to vector<8x1xf32>
    %131 = tpu.reciprocal %130 {approx = true} : vector<8x1xf32> -> vector<8x1xf32>
    %132 = vector.broadcast %131 : vector<8x1xf32> to vector<8x8xf32>
    %133 = arith.mulf %128, %132 : vector<8x8xf32>
    %134 = vector.extract_strided_slice %120 {offsets = [0, 0], sizes = [8, 8], strides = [1, 1]} : vector<8x32xf32> to vector<8x8xf32>
    %cst_61 = arith.constant dense<0.000000e+00> : vector<8x8xf32>
    %135 = tpu.matmul %133, %134, %cst_61 {dimension_numbers = #tpu.dot_dimension_numbers<[1], [0], [0], [1], [0, 0, 1, 1], [], []>} : vector<8x8xf32>, vector<8x8xf32>, vector<8x8xf32> -> vector<8x8xf32>
    %136 = vector.extract_strided_slice %115 {offsets = [0, 8], sizes = [8, 8], strides = [1, 1]} : vector<8x32xf32> to vector<8x8xf32>
    %137 = vector.extract_strided_slice %119 {offsets = [0, 8], sizes = [8, 8], strides = [1, 1]} : vector<8x32xf32> to vector<8x8xf32>
    %cst_62 = arith.constant dense<0.000000e+00> : vector<8x8xf32>
    %138 = tpu.matmul %136, %137, %cst_62 {dimension_numbers = #tpu.dot_dimension_numbers<[1], [1], [0], [0], [0, 0, 1, 0], [], []>} : vector<8x8xf32>, vector<8x8xf32>, vector<8x8xf32> -> vector<8x8xf32>
    %cst_63 = arith.constant dense<0xFF800000> : vector<8xf32>
    %139 = vector.multi_reduction <maximumf>, %138, %cst_63 [1] : vector<8x8xf32> to vector<8xf32>
    %140 = vector.shape_cast %139 : vector<8xf32> to vector<8x1xf32>
    %141 = vector.broadcast %140 : vector<8x1xf32> to vector<8x8xf32>
    %142 = arith.subf %138, %141 : vector<8x8xf32>
    %143 = math.exp %142 : vector<8x8xf32>
    %cst_64 = arith.constant dense<0.000000e+00> : vector<8xf32>
    %144 = vector.multi_reduction <add>, %143, %cst_64 [1] : vector<8x8xf32> to vector<8xf32>
    %145 = vector.shape_cast %144 : vector<8xf32> to vector<8x1xf32>
    %146 = tpu.reciprocal %145 {approx = true} : vector<8x1xf32> -> vector<8x1xf32>
    %147 = vector.broadcast %146 : vector<8x1xf32> to vector<8x8xf32>
    %148 = arith.mulf %143, %147 : vector<8x8xf32>
    %149 = vector.extract_strided_slice %120 {offsets = [0, 8], sizes = [8, 8], strides = [1, 1]} : vector<8x32xf32> to vector<8x8xf32>
    %cst_65 = arith.constant dense<0.000000e+00> : vector<8x8xf32>
    %150 = tpu.matmul %148, %149, %cst_65 {dimension_numbers = #tpu.dot_dimension_numbers<[1], [0], [0], [1], [0, 0, 1, 1], [], []>} : vector<8x8xf32>, vector<8x8xf32>, vector<8x8xf32> -> vector<8x8xf32>
    %151 = vector.extract_strided_slice %115 {offsets = [0, 16], sizes = [8, 8], strides = [1, 1]} : vector<8x32xf32> to vector<8x8xf32>
    %152 = vector.extract_strided_slice %119 {offsets = [0, 16], sizes = [8, 8], strides = [1, 1]} : vector<8x32xf32> to vector<8x8xf32>
    %cst_66 = arith.constant dense<0.000000e+00> : vector<8x8xf32>
    %153 = tpu.matmul %151, %152, %cst_66 {dimension_numbers = #tpu.dot_dimension_numbers<[1], [1], [0], [0], [0, 0, 1, 0], [], []>} : vector<8x8xf32>, vector<8x8xf32>, vector<8x8xf32> -> vector<8x8xf32>
    %cst_67 = arith.constant dense<0xFF800000> : vector<8xf32>
    %154 = vector.multi_reduction <maximumf>, %153, %cst_67 [1] : vector<8x8xf32> to vector<8xf32>
    %155 = vector.shape_cast %154 : vector<8xf32> to vector<8x1xf32>
    %156 = vector.broadcast %155 : vector<8x1xf32> to vector<8x8xf32>
    %157 = arith.subf %153, %156 : vector<8x8xf32>
    %158 = math.exp %157 : vector<8x8xf32>
    %cst_68 = arith.constant dense<0.000000e+00> : vector<8xf32>
    %159 = vector.multi_reduction <add>, %158, %cst_68 [1] : vector<8x8xf32> to vector<8xf32>
    %160 = vector.shape_cast %159 : vector<8xf32> to vector<8x1xf32>
    %161 = tpu.reciprocal %160 {approx = true} : vector<8x1xf32> -> vector<8x1xf32>
    %162 = vector.broadcast %161 : vector<8x1xf32> to vector<8x8xf32>
    %163 = arith.mulf %158, %162 : vector<8x8xf32>
    %164 = vector.extract_strided_slice %120 {offsets = [0, 16], sizes = [8, 8], strides = [1, 1]} : vector<8x32xf32> to vector<8x8xf32>
    %cst_69 = arith.constant dense<0.000000e+00> : vector<8x8xf32>
    %165 = tpu.matmul %163, %164, %cst_69 {dimension_numbers = #tpu.dot_dimension_numbers<[1], [0], [0], [1], [0, 0, 1, 1], [], []>} : vector<8x8xf32>, vector<8x8xf32>, vector<8x8xf32> -> vector<8x8xf32>
    %166 = vector.extract_strided_slice %115 {offsets = [0, 24], sizes = [8, 8], strides = [1, 1]} : vector<8x32xf32> to vector<8x8xf32>
    %167 = vector.extract_strided_slice %119 {offsets = [0, 24], sizes = [8, 8], strides = [1, 1]} : vector<8x32xf32> to vector<8x8xf32>
    %cst_70 = arith.constant dense<0.000000e+00> : vector<8x8xf32>
    %168 = tpu.matmul %166, %167, %cst_70 {dimension_numbers = #tpu.dot_dimension_numbers<[1], [1], [0], [0], [0, 0, 1, 0], [], []>} : vector<8x8xf32>, vector<8x8xf32>, vector<8x8xf32> -> vector<8x8xf32>
    %cst_71 = arith.constant dense<0xFF800000> : vector<8xf32>
    %169 = vector.multi_reduction <maximumf>, %168, %cst_71 [1] : vector<8x8xf32> to vector<8xf32>
    %170 = vector.shape_cast %169 : vector<8xf32> to vector<8x1xf32>
    %171 = vector.broadcast %170 : vector<8x1xf32> to vector<8x8xf32>
    %172 = arith.subf %168, %171 : vector<8x8xf32>
    %173 = math.exp %172 : vector<8x8xf32>
    %cst_72 = arith.constant dense<0.000000e+00> : vector<8xf32>
    %174 = vector.multi_reduction <add>, %173, %cst_72 [1] : vector<8x8xf32> to vector<8xf32>
    %175 = vector.shape_cast %174 : vector<8xf32> to vector<8x1xf32>
    %176 = tpu.reciprocal %175 {approx = true} : vector<8x1xf32> -> vector<8x1xf32>
    %177 = vector.broadcast %176 : vector<8x1xf32> to vector<8x8xf32>
    %178 = arith.mulf %173, %177 : vector<8x8xf32>
    %179 = vector.extract_strided_slice %120 {offsets = [0, 24], sizes = [8, 8], strides = [1, 1]} : vector<8x32xf32> to vector<8x8xf32>
    %cst_73 = arith.constant dense<0.000000e+00> : vector<8x8xf32>
    %180 = tpu.matmul %178, %179, %cst_73 {dimension_numbers = #tpu.dot_dimension_numbers<[1], [0], [0], [1], [0, 0, 1, 1], [], []>} : vector<8x8xf32>, vector<8x8xf32>, vector<8x8xf32> -> vector<8x8xf32>
    %181 = tpu.concatenate %135, %150, %165, %180 in 1 : vector<8x8xf32>, vector<8x8xf32>, vector<8x8xf32>, vector<8x8xf32> -> vector<8x32xf32>
    %cst_74 = arith.constant dense<0.000000e+00> : vector<8x32xf32>
    %182 = tpu.matmul %181, %111, %cst_74 {dimension_numbers = #tpu.dot_dimension_numbers<[1], [0], [0], [1], [0, 0, 1, 1], [], []>} : vector<8x32xf32>, vector<32x32xf32>, vector<8x32xf32> -> vector<8x32xf32>
    %183 = vector.broadcast %112 : vector<1x32xf32> to vector<8x32xf32>
    %184 = arith.addf %182, %183 : vector<8x32xf32>
    %185 = arith.addf %106, %184 : vector<8x32xf32>
    %c0_75 = arith.constant 0 : index
    %c0_76 = arith.constant 0 : index
    %186 = vector.load %arg17[%c0_75, %c0_76] : memref<1x32xf32, #tpu.memory_space<vmem>>, vector<1x32xf32>
    %c0_77 = arith.constant 0 : index
    %c0_78 = arith.constant 0 : index
    %187 = vector.load %arg18[%c0_77, %c0_78] : memref<1x32xf32, #tpu.memory_space<vmem>>, vector<1x32xf32>
    %cst_79 = arith.constant dense<0.000000e+00> : vector<8xf32>
    %188 = vector.multi_reduction <add>, %185, %cst_79 [1] : vector<8x32xf32> to vector<8xf32>
    %189 = vector.shape_cast %188 : vector<8xf32> to vector<8x1xf32>
    %cst_80 = arith.constant 3.200000e+01 : f32
    %190 = vector.broadcast %cst_80 : f32 to vector<8x1xf32>
    %191 = arith.divf %189, %190 : vector<8x1xf32>
    %192 = vector.broadcast %191 : vector<8x1xf32> to vector<8x32xf32>
    %193 = arith.subf %185, %192 : vector<8x32xf32>
    %194 = arith.mulf %193, %193 : vector<8x32xf32>
    %cst_81 = arith.constant dense<0.000000e+00> : vector<8xf32>
    %195 = vector.multi_reduction <add>, %194, %cst_81 [1] : vector<8x32xf32> to vector<8xf32>
    %196 = vector.shape_cast %195 : vector<8xf32> to vector<8x1xf32>
    %cst_82 = arith.constant 3.200000e+01 : f32
    %197 = vector.broadcast %cst_82 : f32 to vector<8x1xf32>
    %198 = arith.divf %196, %197 : vector<8x1xf32>
    %199 = vector.broadcast %191 : vector<8x1xf32> to vector<8x32xf32>
    %200 = arith.subf %185, %199 : vector<8x32xf32>
    %cst_83 = arith.constant 9.99999974E-6 : f32
    %201 = vector.broadcast %cst_83 : f32 to vector<8x1xf32>
    %202 = arith.addf %198, %201 : vector<8x1xf32>
    %203 = math.rsqrt %202 : vector<8x1xf32>
    %204 = vector.broadcast %203 : vector<8x1xf32> to vector<8x32xf32>
    %205 = arith.mulf %200, %204 : vector<8x32xf32>
    %206 = vector.broadcast %186 : vector<1x32xf32> to vector<8x32xf32>
    %207 = arith.mulf %205, %206 : vector<8x32xf32>
    %208 = vector.broadcast %187 : vector<1x32xf32> to vector<8x32xf32>
    %209 = arith.addf %207, %208 : vector<8x32xf32>
    %c0_84 = arith.constant 0 : index
    %c0_85 = arith.constant 0 : index
    %210 = vector.load %arg19[%c0_84, %c0_85] : memref<32x64xf32, #tpu.memory_space<vmem>>, vector<32x64xf32>
    %cst_86 = arith.constant dense<0.000000e+00> : vector<8x64xf32>
    %211 = tpu.matmul %209, %210, %cst_86 {dimension_numbers = #tpu.dot_dimension_numbers<[1], [0], [0], [1], [0, 0, 1, 1], [], []>} : vector<8x32xf32>, vector<32x64xf32>, vector<8x64xf32> -> vector<8x64xf32>
    %c0_87 = arith.constant 0 : index
    %c0_88 = arith.constant 0 : index
    %212 = vector.load %arg20[%c0_87, %c0_88] : memref<1x64xf32, #tpu.memory_space<vmem>>, vector<1x64xf32>
    %213 = vector.broadcast %212 : vector<1x64xf32> to vector<8x64xf32>
    %214 = arith.addf %211, %213 : vector<8x64xf32>
    %cst_89 = arith.constant 0.000000e+00 : f32
    %215 = vector.broadcast %cst_89 : f32 to vector<8x64xf32>
    %216 = arith.maximumf %214, %215 : vector<8x64xf32>
    %c0_90 = arith.constant 0 : index
    %c0_91 = arith.constant 0 : index
    %217 = vector.load %arg21[%c0_90, %c0_91] : memref<64x32xf32, #tpu.memory_space<vmem>>, vector<64x32xf32>
    %cst_92 = arith.constant dense<0.000000e+00> : vector<8x32xf32>
    %218 = tpu.matmul %216, %217, %cst_92 {dimension_numbers = #tpu.dot_dimension_numbers<[1], [0], [0], [1], [0, 0, 1, 1], [], []>} : vector<8x64xf32>, vector<64x32xf32>, vector<8x32xf32> -> vector<8x32xf32>
    %c0_93 = arith.constant 0 : index
    %c0_94 = arith.constant 0 : index
    %219 = vector.load %arg22[%c0_93, %c0_94] : memref<1x32xf32, #tpu.memory_space<vmem>>, vector<1x32xf32>
    %220 = vector.broadcast %219 : vector<1x32xf32> to vector<8x32xf32>
    %221 = arith.addf %218, %220 : vector<8x32xf32>
    %222 = arith.addf %209, %221 : vector<8x32xf32>
    %c0_95 = arith.constant 0 : index
    %c0_96 = arith.constant 0 : index
    %223 = vector.load %arg23[%c0_95, %c0_96] : memref<1x32xf32, #tpu.memory_space<vmem>>, vector<1x32xf32>
    %c0_97 = arith.constant 0 : index
    %c0_98 = arith.constant 0 : index
    %224 = vector.load %arg24[%c0_97, %c0_98] : memref<1x32xf32, #tpu.memory_space<vmem>>, vector<1x32xf32>
    %cst_99 = arith.constant dense<0.000000e+00> : vector<8xf32>
    %225 = vector.multi_reduction <add>, %222, %cst_99 [1] : vector<8x32xf32> to vector<8xf32>
    %226 = vector.shape_cast %225 : vector<8xf32> to vector<8x1xf32>
    %cst_100 = arith.constant 3.200000e+01 : f32
    %227 = vector.broadcast %cst_100 : f32 to vector<8x1xf32>
    %228 = arith.divf %226, %227 : vector<8x1xf32>
    %229 = vector.broadcast %228 : vector<8x1xf32> to vector<8x32xf32>
    %230 = arith.subf %222, %229 : vector<8x32xf32>
    %231 = arith.mulf %230, %230 : vector<8x32xf32>
    %cst_101 = arith.constant dense<0.000000e+00> : vector<8xf32>
    %232 = vector.multi_reduction <add>, %231, %cst_101 [1] : vector<8x32xf32> to vector<8xf32>
    %233 = vector.shape_cast %232 : vector<8xf32> to vector<8x1xf32>
    %cst_102 = arith.constant 3.200000e+01 : f32
    %234 = vector.broadcast %cst_102 : f32 to vector<8x1xf32>
    %235 = arith.divf %233, %234 : vector<8x1xf32>
    %236 = vector.broadcast %228 : vector<8x1xf32> to vector<8x32xf32>
    %237 = arith.subf %222, %236 : vector<8x32xf32>
    %cst_103 = arith.constant 9.99999974E-6 : f32
    %238 = vector.broadcast %cst_103 : f32 to vector<8x1xf32>
    %239 = arith.addf %235, %238 : vector<8x1xf32>
    %240 = math.rsqrt %239 : vector<8x1xf32>
    %241 = vector.broadcast %240 : vector<8x1xf32> to vector<8x32xf32>
    %242 = arith.mulf %237, %241 : vector<8x32xf32>
    %243 = vector.broadcast %223 : vector<1x32xf32> to vector<8x32xf32>
    %244 = arith.mulf %242, %243 : vector<8x32xf32>
    %245 = vector.broadcast %224 : vector<1x32xf32> to vector<8x32xf32>
    %246 = arith.addf %244, %245 : vector<8x32xf32>
    %c0_104 = arith.constant 0 : index
    %c0_105 = arith.constant 0 : index
    %c0_106 = arith.constant 0 : index
    %247 = vector.load %arg25[%c0_104, %c0_105, %c0_106] : memref<1x8x32xf32, #tpu.memory_space<vmem>>, vector<1x8x32xf32>
    %248 = vector.shape_cast %247 : vector<1x8x32xf32> to vector<8x32xf32>
    %249 = vector.shape_cast %246 : vector<8x32xf32> to vector<1x8x32xf32>
    tpu.vector_store %arg25[%c0_104, %c0_105, %c0_106], %249 {strides = array<i32>} : memref<1x8x32xf32, #tpu.memory_space<vmem>>, vector<1x8x32xf32>,
    return
  }
  func.func @transform_0(%arg0: i32) -> (i32, i32, i32) {
    %c0_i32 = arith.constant 0 : i32
    %c0_i32_0 = arith.constant 0 : i32
    %c0_i32_1 = arith.constant 0 : i32
    return %arg0, %c0_i32, %c0_i32_0 : i32, i32, i32
  }
  func.func @transform_1(%arg0: i32) -> (i32, i32, i32) {
    %c0_i32 = arith.constant 0 : i32
    %c0_i32_0 = arith.constant 0 : i32
    %c0_i32_1 = arith.constant 0 : i32
    return %arg0, %c0_i32, %c0_i32_0 : i32, i32, i32
  }
  func.func @transform_2(%arg0: i32) -> (i32, i32) {
    %c0_i32 = arith.constant 0 : i32
    %c0_i32_0 = arith.constant 0 : i32
    %c0_i32_1 = arith.constant 0 : i32
    return %c0_i32, %c0_i32_0 : i32, i32
  }
  func.func @transform_3(%arg0: i32) -> (i32, i32) {
    %c0_i32 = arith.constant 0 : i32
    %c0_i32_0 = arith.constant 0 : i32
    %c0_i32_1 = arith.constant 0 : i32
    return %c0_i32, %c0_i32_0 : i32, i32
  }
  func.func @transform_4(%arg0: i32) -> (i32, i32) {
    %c0_i32 = arith.constant 0 : i32
    %c0_i32_0 = arith.constant 0 : i32
    %c0_i32_1 = arith.constant 0 : i32
    return %c0_i32, %c0_i32_0 : i32, i32
  }
  func.func @transform_5(%arg0: i32) -> (i32, i32) {
    %c0_i32 = arith.constant 0 : i32
    %c0_i32_0 = arith.constant 0 : i32
    %c0_i32_1 = arith.constant 0 : i32
    return %c0_i32, %c0_i32_0 : i32, i32
  }
  func.func @transform_6(%arg0: i32) -> (i32, i32) {
    %c0_i32 = arith.constant 0 : i32
    %c0_i32_0 = arith.constant 0 : i32
    %c0_i32_1 = arith.constant 0 : i32
    return %c0_i32, %c0_i32_0 : i32, i32
  }
  func.func @transform_7(%arg0: i32) -> (i32, i32) {
    %c0_i32 = arith.constant 0 : i32
    %c0_i32_0 = arith.constant 0 : i32
    %c0_i32_1 = arith.constant 0 : i32
    return %c0_i32, %c0_i32_0 : i32, i32
  }
  func.func @transform_8(%arg0: i32) -> (i32, i32) {
    %c0_i32 = arith.constant 0 : i32
    %c0_i32_0 = arith.constant 0 : i32
    %c0_i32_1 = arith.constant 0 : i32
    return %c0_i32, %c0_i32_0 : i32, i32
  }
  func.func @transform_9(%arg0: i32) -> (i32, i32) {
    %c0_i32 = arith.constant 0 : i32
    %c0_i32_0 = arith.constant 0 : i32
    %c0_i32_1 = arith.constant 0 : i32
    return %c0_i32, %c0_i32_0 : i32, i32
  }
  func.func @transform_10(%arg0: i32) -> (i32, i32) {
    %c0_i32 = arith.constant 0 : i32
    %c0_i32_0 = arith.constant 0 : i32
    %c0_i32_1 = arith.constant 0 : i32
    return %c0_i32, %c0_i32_0 : i32, i32
  }
  func.func @transform_11(%arg0: i32) -> (i32, i32) {
    %c0_i32 = arith.constant 0 : i32
    %c0_i32_0 = arith.constant 0 : i32
    %c0_i32_1 = arith.constant 0 : i32
    return %c0_i32, %c0_i32_0 : i32, i32
  }
  func.func @transform_12(%arg0: i32) -> (i32, i32) {
    %c0_i32 = arith.constant 0 : i32
    %c0_i32_0 = arith.constant 0 : i32
    %c0_i32_1 = arith.constant 0 : i32
    return %c0_i32, %c0_i32_0 : i32, i32
  }
  func.func @transform_13(%arg0: i32) -> (i32, i32) {
    %c0_i32 = arith.constant 0 : i32
    %c0_i32_0 = arith.constant 0 : i32
    %c0_i32_1 = arith.constant 0 : i32
    return %c0_i32, %c0_i32_0 : i32, i32
  }
  func.func @transform_14(%arg0: i32) -> (i32, i32) {
    %c0_i32 = arith.constant 0 : i32
    %c0_i32_0 = arith.constant 0 : i32
    %c0_i32_1 = arith.constant 0 : i32
    return %c0_i32, %c0_i32_0 : i32, i32
  }
  func.func @transform_15(%arg0: i32) -> (i32, i32) {
    %c0_i32 = arith.constant 0 : i32
    %c0_i32_0 = arith.constant 0 : i32
    %c0_i32_1 = arith.constant 0 : i32
    return %c0_i32, %c0_i32_0 : i32, i32
  }
  func.func @transform_16(%arg0: i32) -> (i32, i32) {
    %c0_i32 = arith.constant 0 : i32
    %c0_i32_0 = arith.constant 0 : i32
    %c0_i32_1 = arith.constant 0 : i32
    return %c0_i32, %c0_i32_0 : i32, i32
  }
  func.func @transform_17(%arg0: i32) -> (i32, i32) {
    %c0_i32 = arith.constant 0 : i32
    %c0_i32_0 = arith.constant 0 : i32
    %c0_i32_1 = arith.constant 0 : i32
    return %c0_i32, %c0_i32_0 : i32, i32
  }
  func.func @transform_18(%arg0: i32) -> (i32, i32) {
    %c0_i32 = arith.constant 0 : i32
    %c0_i32_0 = arith.constant 0 : i32
    %c0_i32_1 = arith.constant 0 : i32
    return %c0_i32, %c0_i32_0 : i32, i32
  }
  func.func @transform_19(%arg0: i32) -> (i32, i32) {
    %c0_i32 = arith.constant 0 : i32
    %c0_i32_0 = arith.constant 0 : i32
    %c0_i32_1 = arith.constant 0 : i32
    return %c0_i32, %c0_i32_0 : i32, i32
  }
  func.func @transform_20(%arg0: i32) -> (i32, i32) {
    %c0_i32 = arith.constant 0 : i32
    %c0_i32_0 = arith.constant 0 : i32
    %c0_i32_1 = arith.constant 0 : i32
    return %c0_i32, %c0_i32_0 : i32, i32
  }
  func.func @transform_21(%arg0: i32) -> (i32, i32) {
    %c0_i32 = arith.constant 0 : i32
    %c0_i32_0 = arith.constant 0 : i32
    %c0_i32_1 = arith.constant 0 : i32
    return %c0_i32, %c0_i32_0 : i32, i32
  }
  func.func @transform_22(%arg0: i32) -> (i32, i32) {
    %c0_i32 = arith.constant 0 : i32
    %c0_i32_0 = arith.constant 0 : i32
    %c0_i32_1 = arith.constant 0 : i32
    return %c0_i32, %c0_i32_0 : i32, i32
  }
  func.func @transform_23(%arg0: i32) -> (i32, i32) {
    %c0_i32 = arith.constant 0 : i32
    %c0_i32_0 = arith.constant 0 : i32
    %c0_i32_1 = arith.constant 0 : i32
    return %c0_i32, %c0_i32_0 : i32, i32
  }
  func.func @transform_24(%arg0: i32) -> (i32, i32, i32) {
    %c0_i32 = arith.constant 0 : i32
    %c0_i32_0 = arith.constant 0 : i32
    %c0_i32_1 = arith.constant 0 : i32
    return %arg0, %c0_i32, %c0_i32_0 : i32, i32, i32
  }
}

</mosaic_0001>

<bundles_post_ra>
// kernel: tpu_custom_call.1
= control target key start
LH: loop header
LB: loop body
LE: loop exit
PB: predicated region body
PF: predicated region fallthrough
CT: control target
= control target key end

     0   :  { %s5168_s0 = inlined_call_operand.hbm [shape: f32[2,8,32], index: 0, kind: input, shape index: {}]   ;;  %s5169_s1 = inlined_call_operand.hbm [shape: f32[2,8,32], index: 1, kind: input, shape index: {}]   ;;  %s5170_s2 = inlined_call_operand.vmem [shape: f32[32,32], index: 2, kind: input, shape index: {}]   ;;  %s5171_s3 = inlined_call_operand.hbm [shape: f32[1,32], index: 3, kind: input, shape index: {}]   ;;  %s5172_s4 = inlined_call_operand.vmem [shape: f32[32,64], index: 4, kind: input, shape index: {}]   ;;  %s5173_s5 = inlined_call_operand.hbm [shape: f32[1,64], index: 5, kind: input, shape index: {}]   ;;  %s5174_s6 = inlined_call_operand.vmem [shape: f32[32,32], index: 6, kind: input, shape index: {}]   ;;  %s5175_s7 = inlined_call_operand.hbm [shape: f32[1,32], index: 7, kind: input, shape index: {}]   ;;  %s5176_s8 = inlined_call_operand.hbm [shape: f32[1,32], index: 8, kind: input, shape index: {}]   ;;  %s5177_s9 = inlined_call_operand.hbm [shape: f32[1,32], index: 9, kind: input, shape index: {}]   ;;  %s5178_s10 = inlined_call_operand.hbm [shape: f32[32,32], index: 10, kind: input, shape index: {}]   ;;  %s5179_s11 = inlined_call_operand.hbm [shape: f32[1,32], index: 11, kind: input, shape index: {}]   ;;  %s5180_s12 = inlined_call_operand.hbm [shape: f32[32,64], index: 12, kind: input, shape index: {}]   ;;  %s5181_s13 = inlined_call_operand.hbm [shape: f32[1,64], index: 13, kind: input, shape index: {}]   ;;  %s5182_s14 = inlined_call_operand.hbm [shape: f32[32,32], index: 14, kind: input, shape index: {}]   ;;  %s5183_s15 = inlined_call_operand.hbm [shape: f32[1,32], index: 15, kind: input, shape index: {}]   ;;  %s5184_s16 = inlined_call_operand.hbm [shape: f32[1,32], index: 16, kind: input, shape index: {}]   ;;  %s5185_s17 = inlined_call_operand.hbm [shape: f32[1,32], index: 17, kind: input, shape index: {}]   ;;  %s5186_s18 = inlined_call_operand.vmem [shape: f32[32,64], index: 18, kind: input, shape index: {}]   ;;  %s5187_s19 = inlined_call_operand.vmem [shape: f32[1,64], index: 19, kind: input, shape index: {}]   ;;  %s5188_s20 = inlined_call_operand.vmem [shape: f32[64,32], index: 20, kind: input, shape index: {}]   ;;  %s5189_s21 = inlined_call_operand.vmem [shape: f32[1,32], index: 21, kind: input, shape index: {}]   ;;  %s5190_s22 = inlined_call_operand.vmem [shape: f32[1,32], index: 22, kind: input, shape index: {}]   ;;  %s5191_s23 = inlined_call_operand.vmem [shape: f32[1,32], index: 23, kind: input, shape index: {}]   ;;  %s5192_s24 = inlined_call_operand.hbm [shape: f32[2,8,32], index: 24, kind: output, shape index: {}]  }
   0x1   :  { %5207 = sst [smem:[#allocation39_spill]] %s5168_s0 }
   0x2   :  { %5208 = sst [smem:[#allocation40_spill]] %s5169_s1 }
   0x3   :  { %5209 = sst [smem:[#allocation41_spill]] %s5170_s2 }
   0x4   :  { %5210 = sst [smem:[#allocation42_spill]] %s5171_s3 }
   0x5   :  { %5211 = sst [smem:[#allocation43_spill]] %s5172_s4 }
   0x6   :  { %5212 = sst [smem:[#allocation44_spill]] %s5173_s5 }
   0x7   :  { %5213 = sst [smem:[#allocation45_spill]] %s5174_s6 }
   0x8   :  { %5214 = sst [smem:[#allocation46_spill]] %s5175_s7 }
   0x9   :  { %5215 = sst [smem:[#allocation47_spill]] %s5176_s8 }
   0xa   :  { %5216 = sst [smem:[#allocation48_spill]] %s5177_s9 }
   0xb   :  { %5217 = sst [smem:[#allocation49_spill]] %s5178_s10 }
   0xc   :  { %5218 = sst [smem:[#allocation50_spill]] %s5179_s11 }
   0xd   :  { %5219 = sst [smem:[#allocation51_spill]] %s5180_s12 }
   0xe   :  { %5220 = sst [smem:[#allocation52_spill]] %s5181_s13 }
   0xf   :  { %5221 = sst [smem:[#allocation53_spill]] %s5182_s14 }
  0x10   :  { %5222 = sst [smem:[#allocation54_spill]] %s5183_s15 }
  0x11   :  { %5223 = sst [smem:[#allocation55_spill]] %s5184_s16 }
  0x12   :  { %5224 = sst [smem:[#allocation56_spill]] %s5185_s17 }
  0x13   :  { %5225 = sst [smem:[#allocation57_spill]] %s5190_s22 }
  0x14   :  { %5226 = sst [smem:[#allocation58_spill]] %s5191_s23 }
  0x15   :  { %5227 = sst [smem:[#allocation59_spill]] %s5192_s24 }
  0x16   :  { %29 = vsyncpa [#allocation3], 0 }
  0x17   :  { %31 = vsyncpa [#allocation3 + $0x1], 0 }
  0x18   :  { %32 = vsyncpa [#allocation6], 0 }
  0x19   :  { %34 = vsyncpa [#allocation6 + $0x1], 0 }
  0x1a   :  { %35 = vsyncpa [#allocation9], 0 }
  0x1b   :  { %36 = vsyncpa [#allocation12], 0 }
  0x1c   :  { %37 = vsyncpa [#allocation15], 0 }
  0x1d   :  { %38 = vsyncpa [#allocation18], 0 }
  0x1e   :  { %39 = vsyncpa [#allocation21], 0 }
  0x1f   :  { %40 = vsyncpa [#allocation24], 0 }
  0x20   :  { %41 = vsyncpa [#allocation4], 0 }
  0x21   :  { %43 = vsyncpa [#allocation4 + $0x1], 0  ;;  %s4527_s5 = smov 0   ;;  %s4529_s26 = smov 0  }
  0x22   :  { %s4531_s27 = smov 0   ;;  %s4533_s28 = smov 0  }
  0x23 LB: > { %5228 = sst [smem:[#allocation37_spill]] %s4366_s27  ;;  %s4372_s6 = smov [#allocation7]   ;;  %s4370_s28 = sphi %s4533_s28, %s5284_s28   ;;  %s4366_s27 = sphi %s4531_s27, %s5281_s27   ;;  %s4362_s26 = sphi %s4529_s26, %s5283_s26   ;;  %s4358_s5 = sphi %s4527_s5, %s5282_s5  }
  0x24   : > { %s610_s2 = sshll.u32 %s4372_s6, 4  ;;  %s4548_s29 = sadd.s32 4294967295, %s4370_s28   ;;  %s611_s2 = int_to_ptr.vmem [resolvable:$true] %s610_s2 }
  0x25   : > { %p3308_p0 = scmp.ge.s32.totalorder %s4370_s28, 1  ;;  %p5199_p1 = scmp.eq.s32.totalorder %s4548_s29, 0 }
  0x26   : > { %p594_p2 = scmp.lt.s32.totalorder %s4370_s28, 3  ;;  %s4373_s7 = smov [#allocation8]  }
  0x27   : > { %s624_s30 = sshll.u32 %s4373_s7, 4  ;;  %s4374_s3 = smov [#allocation11]   ;;  %s4560_s30 = int_to_ptr.vmem [resolvable:$true] %s624_s30 }
  0x28   : > { %p4553_p3 = pnand %p3308_p0, %p594_p2  ;;  %s649_s25 = sshll.u32 %s4374_s3, 4  ;;  %s4568_s25 = int_to_ptr.vmem [resolvable:$true] %s649_s25 }
  0x29   : > { %s4375_s4 = smov [#allocation14]   ;;  %s3891_s7 = scalar_lea.vmem %s611_s2, 16 }
  0x2a   : > { %s5229_s0 = scalar_select %p4553_p3, 1, 0 }
  0x2b   : > { %p3704_p5 = pneg %p4553_p3  ;;  %s4570_s1 = sshll.u32 %s4375_s4, 4  ;;  %s671_s1 = int_to_ptr.vmem [resolvable:$true] %s4570_s1 }
  0x2c   : > { %p3892_p8 = scmp.ne.s32.totalorder %s611_s2, %s3891_s7  ;;  %s3898_s3 = scalar_lea.vmem %s611_s2, 32 }
  0x2d   : > { %p4564_p6 = pnand %p3704_p5, %p5199_p1  ;;  %p3899_p11 = scmp.lt.s32.totalorder %s611_s2, %s611_s2 }
  0x2e   : > { %p3900_p12 = scmp.lt.s32.totalorder %s3898_s3, %s3891_s7 }
  0x2f   : > { %p4574_p7 = pneg %p4564_p6 }
  0x30   : > { %p3901_p13 = por %p3900_p12, %p3899_p11 }
  0x31   : > { %p3894_p9 = pnand %p3892_p8, %p4574_p7 }
  0x33   : > { %p3895_p10 = pneg %p3894_p9 }
  0x35   : > { %p3902_p0 = pnand %p3901_p13, %p3895_p10 }
  0x37   : > { %3905 = shalt.err (!%p3902_p0)
}
  0x38   : > { %s5232_s23 = sld [smem:[#allocation42_spill]]  ;;  %s3917_s22 = scalar_lea.vmem %s4560_s30, 16 }
  0x39   : > { %p3918_p2 = scmp.ne.s32.totalorder %s4560_s30, %s3917_s22  ;;  %s3924_s7 = scalar_lea.vmem %s4560_s30, 32 }
  0x3a   : > { %p3925_p9 = scmp.lt.s32.totalorder %s4560_s30, %s4560_s30  ;;  %p3926_p10 = scmp.lt.s32.totalorder %s3924_s7, %s3917_s22 }
  0x3b   : > { %p3920_p5 = pnand %p3918_p2, %p4574_p7 }
  0x3c   : > { %p3927_p11 = por %p3926_p10, %p3925_p9 }
  0x3d   : > { %p3921_p8 = pneg %p3920_p5 }
  0x3e   : > { %3707 = dma.hbm_to_vmem [thread:$0]  (!%p4564_p6), %s5232_s23, 16, %s611_s2, [#allocation6]  }
  0x3f   : > { %p3928_p12 = pnand %p3927_p11, %p3921_p8 }
  0x41   : > { %3931 = shalt.err (!%p3928_p12)
}
  0x42   : > { %s5233_s4 = sld [smem:[#allocation44_spill]]  ;;  %s3943_s23 = scalar_lea.vmem %s4568_s25, 16 }
  0x43   : > { %p3944_p13 = scmp.ne.s32.totalorder %s4568_s25, %s3943_s23  ;;  %s3950_s22 = scalar_lea.vmem %s4568_s25, 32 }
  0x44   : > { %p3951_p5 = scmp.lt.s32.totalorder %s4568_s25, %s4568_s25  ;;  %p3952_p8 = scmp.lt.s32.totalorder %s3950_s22, %s3943_s23 }
  0x45   : > { %p3946_p0 = pnand %p3944_p13, %p4574_p7 }
  0x46   : > { %p3953_p9 = por %p3952_p8, %p3951_p5 }
  0x47   : > { %p3947_p2 = pneg %p3946_p0 }
  0x48   : > { %3710 = dma.hbm_to_vmem [thread:$0]  (!%p4564_p6), %s5233_s4, 16, %s4560_s30, [#allocation9]  }
  0x49   : > { %p3954_p10 = pnand %p3953_p9, %p3947_p2 }
  0x4b   : > { %3957 = shalt.err (!%p3954_p10)
}
  0x4c   : > { %s5234_s24 = sld [smem:[#allocation47_spill]]  ;;  %s3969_s30 = scalar_lea.vmem %s671_s1, 512 }
  0x4d   : > { %p3970_p11 = scmp.ne.s32.totalorder %s671_s1, %s3969_s30  ;;  %p3977_p0 = scmp.lt.s32.totalorder %s671_s1, %s671_s1 }
  0x4e   : > { %p3978_p4 = scmp.lt.s32.totalorder %s3969_s30, %s3969_s30 }
  0x4f   : > { %p3972_p12 = pnand %p3970_p11, %p4574_p7 }
  0x50   : > { %p3979_p5 = por %p3978_p4, %p3977_p0 }
  0x51   : > { %p3973_p13 = pneg %p3972_p12 }
  0x52   : > { %3716 = dma.hbm_to_vmem [thread:$0]  (!%p4564_p6), %s5234_s24, 16, %s4568_s25, [#allocation12]  }
  0x53   : > { %p3980_p2 = pnand %p3979_p5, %p3973_p13 }
  0x55   : > { %3983 = shalt.err (!%p3980_p2)
}
  0x56   : > { %s4376_s3 = smov 128   ;;  %s4377_s4 = smov 8  }
  0x57   : > { %s5235_s10 = sld [smem:[#allocation49_spill]]  ;;  %s4378_s22 = smov [#allocation17]  }
  0x58   : > { %s694_s2 = sshll.u32 %s4378_s22, 4  ;;  %s4379_s7 = smov [#allocation20]   ;;  %s695_s2 = int_to_ptr.vmem [resolvable:$true] %s694_s2 }
  0x59   : > { %s718_s24 = sshll.u32 %s4379_s7, 4  ;;  %s3995_s30 = scalar_lea.vmem %s695_s2, 512  ;;  %s719_s24 = int_to_ptr.vmem [resolvable:$true] %s718_s24 }
  0x5a   : > { %p3996_p4 = scmp.ne.s32.totalorder %s695_s2, %s3995_s30  ;;  %p4003_p10 = scmp.lt.s32.totalorder %s695_s2, %s695_s2 }
  0x5b   : > { %p4004_p11 = scmp.lt.s32.totalorder %s3995_s30, %s3995_s30 }
  0x5c   : > { %p3998_p8 = pnand %p3996_p4, %p4574_p7 }
  0x5d   : > { %3722 = dma.hbm_to_vmem [thread:$0]  (!%p4564_p6), %s5235_s10, 512, %s671_s1, [#allocation15], %s4376_s3, %s4376_s3, %s4377_s4  }
  0x5e   : > { %p3999_p9 = pneg %p3998_p8  ;;  %p4005_p12 = por %p4004_p11, %p4003_p10 }
  0x60   : > { %p4006_p13 = pnand %p4005_p12, %p3999_p9 }
  0x62   : > { %4009 = shalt.err (!%p4006_p13)
}
  0x63   : > { %s5236_s12 = sld [smem:[#allocation51_spill]]  ;;  %s4021_s23 = scalar_lea.vmem %s719_s24, 512 }
  0x64   : > { %p4022_p0 = scmp.ne.s32.totalorder %s719_s24, %s4021_s23  ;;  %p4029_p4 = scmp.lt.s32.totalorder %s719_s24, %s719_s24 }
  0x65   : > { %p4030_p8 = scmp.lt.s32.totalorder %s4021_s23, %s4021_s23 }
  0x66   : > { %p4024_p5 = pnand %p4022_p0, %p4574_p7 }
  0x67   : > { %p4031_p10 = por %p4030_p8, %p4029_p4 }
  0x68   : > { %p4025_p2 = pneg %p4024_p5 }
  0x69   : > { %3728 = dma.hbm_to_vmem [thread:$0]  (!%p4564_p6), %s5236_s12, 512, %s695_s2, [#allocation18], %s4376_s3, %s4376_s3, %s4377_s4  }
  0x6a   : > { %p4032_p9 = pnand %p4031_p10, %p4025_p2 }
  0x6c   : > { %4035 = shalt.err (!%p4032_p9)
}
  0x6d   : > { %s5237_s14 = sld [smem:[#allocation53_spill]]  ;;  %s4380_s2 = smov [#allocation23]  }
  0x6e   : > { %s743_s30 = sshll.u32 %s4380_s2, 4  ;;  %s4381_s1 = smov [#allocation10]   ;;  %s744_s30 = int_to_ptr.vmem [resolvable:$true] %s743_s30 }
  0x6f   : > { %s638_s25 = sshll.u32 %s4381_s1, 4  ;;  %s4047_s23 = scalar_lea.vmem %s744_s30, 16  ;;  %s639_s25 = int_to_ptr.vmem [resolvable:$true] %s638_s25 }
  0x70   : > { %p4048_p11 = scmp.ne.s32.totalorder %s744_s30, %s4047_s23  ;;  %s4054_s10 = scalar_lea.vmem %s744_s30, 32 }
  0x71   : > { %p4055_p0 = scmp.lt.s32.totalorder %s744_s30, %s744_s30  ;;  %p4056_p5 = scmp.lt.s32.totalorder %s4054_s10, %s4047_s23 }
  0x72   : > { %p4050_p12 = pnand %p4048_p11, %p4574_p7 }
  0x73   : > { %3734 = dma.hbm_to_vmem [thread:$0]  (!%p4564_p6), %s5237_s14, 512, %s719_s24, [#allocation21], %s4376_s3, %s4376_s3, %s4377_s4  }
  0x74   : > { %p4051_p13 = pneg %p4050_p12  ;;  %p4057_p2 = por %p4056_p5, %p4055_p0 }
  0x76   : > { %p4058_p4 = pnand %p4057_p2, %p4051_p13 }
  0x78   : > { %4061 = shalt.err (!%p4058_p4)
}
  0x79   : > { %s5238_s16 = sld [smem:[#allocation55_spill]]  ;;  %s4073_s24 = scalar_lea.vmem %s639_s25, 16 }
  0x7a   : > { %p4074_p8 = scmp.ne.s32.totalorder %s639_s25, %s4073_s24  ;;  %s4080_s22 = scalar_lea.vmem %s639_s25, 32 }
  0x7b   : > { %p4081_p11 = scmp.lt.s32.totalorder %s639_s25, %s639_s25  ;;  %p4082_p12 = scmp.lt.s32.totalorder %s4080_s22, %s4073_s24 }
  0x7c   : > { %p4076_p10 = pnand %p4074_p8, %p4574_p7 }
  0x7d   : > { %p4083_p1 = por %p4082_p12, %p4081_p11 }
  0x7e   : > { %p4077_p9 = pneg %p4076_p10 }
  0x7f   : > { %3740 = dma.hbm_to_vmem [thread:$0]  (!%p4564_p6), %s5238_s16, 16, %s744_s30, [#allocation24]  }
  0x80   : > { %p4084_p3 = pnand %p4083_p1, %p4077_p9 }
  0x82   : > { %4087 = shalt.err (!%p4084_p3)
}
  0x83   : > { %s5239_s2 = sld [smem:[#allocation46_spill]]  ;;  %s4382_s1 = smov [#allocation13]  }
  0x84   : > { %s660_s30 = sshll.u32 %s4382_s1, 4  ;;  %s4383_s23 = smov [#allocation16]   ;;  %s661_s30 = int_to_ptr.vmem [resolvable:$true] %s660_s30 }
  0x85   : > { %s684_s3 = sshll.u32 %s4383_s23, 4  ;;  %s4099_s4 = scalar_lea.vmem %s661_s30, 16  ;;  %s685_s3 = int_to_ptr.vmem [resolvable:$true] %s684_s3 }
  0x86   : > { %p4100_p13 = scmp.ne.s32.totalorder %s661_s30, %s4099_s4  ;;  %s4106_s24 = scalar_lea.vmem %s661_s30, 32 }
  0x87   : > { %p4107_p1 = scmp.lt.s32.totalorder %s661_s30, %s661_s30  ;;  %p4108_p3 = scmp.lt.s32.totalorder %s4106_s24, %s4099_s4 }
  0x88   : > { %p4102_p0 = pnand %p4100_p13, %p4574_p7 }
  0x89   : > { %3713 = dma.hbm_to_vmem [thread:$0]  (!%p4564_p6), %s5239_s2, 16, %s639_s25, [#allocation9]  }
  0x8a   : > { %p4103_p5 = pneg %p4102_p0  ;;  %p4109_p2 = por %p4108_p3, %p4107_p1 }
  0x8c   : > { %p4110_p4 = pnand %p4109_p2, %p4103_p5 }
  0x8e   : > { %4113 = shalt.err (!%p4110_p4)
}
  0x8f   : > { %s5240_s9 = sld [smem:[#allocation48_spill]]  ;;  %s4125_s10 = scalar_lea.vmem %s685_s3, 16 }
  0x90   : > { %p4126_p8 = scmp.ne.s32.totalorder %s685_s3, %s4125_s10  ;;  %s4132_s7 = scalar_lea.vmem %s685_s3, 32 }
  0x91   : > { %p4133_p11 = scmp.lt.s32.totalorder %s685_s3, %s685_s3  ;;  %p4134_p12 = scmp.lt.s32.totalorder %s4132_s7, %s4125_s10 }
  0x92   : > { %p4128_p10 = pnand %p4126_p8, %p4574_p7 }
  0x93   : > { %p4135_p13 = por %p4134_p12, %p4133_p11 }
  0x94   : > { %p4129_p9 = pneg %p4128_p10 }
  0x95   : > { %3719 = dma.hbm_to_vmem [thread:$0]  (!%p4564_p6), %s5240_s9, 16, %s661_s30, [#allocation12]  }
  0x96   : > { %p4136_p0 = pnand %p4135_p13, %p4129_p9 }
  0x98   : > { %4139 = shalt.err (!%p4136_p0)
}
  0x99   : > { %s5241_s11 = sld [smem:[#allocation50_spill]]  ;;  %s4384_s23 = smov [#allocation19]  }
  0x9a   : > { %s708_s30 = sshll.u32 %s4384_s23, 4  ;;  %s4385_s4 = smov [#allocation22]   ;;  %s709_s30 = int_to_ptr.vmem [resolvable:$true] %s708_s30 }
  0x9b   : > { %s732_s24 = sshll.u32 %s4385_s4, 4  ;;  %s4151_s25 = scalar_lea.vmem %s709_s30, 16  ;;  %s733_s24 = int_to_ptr.vmem [resolvable:$true] %s732_s24 }
  0x9c   : > { %p4152_p5 = scmp.ne.s32.totalorder %s709_s30, %s4151_s25  ;;  %s4158_s22 = scalar_lea.vmem %s709_s30, 32 }
  0x9d   : > { %p4159_p2 = scmp.lt.s32.totalorder %s709_s30, %s709_s30  ;;  %p4160_p4 = scmp.lt.s32.totalorder %s4158_s22, %s4151_s25 }
  0x9e   : > { %p4154_p1 = pnand %p4152_p5, %p4574_p7 }
  0x9f   : > { %3725 = dma.hbm_to_vmem [thread:$0]  (!%p4564_p6), %s5241_s11, 16, %s685_s3, [#allocation15]  }
  0xa0   : > { %p4155_p3 = pneg %p4154_p1  ;;  %p4161_p8 = por %p4160_p4, %p4159_p2 }
  0xa2   : > { %p4162_p10 = pnand %p4161_p8, %p4155_p3 }
  0xa4   : > { %4165 = shalt.err (!%p4162_p10)
}
  0xa5   : > { %s5242_s13 = sld [smem:[#allocation52_spill]]  ;;  %s4177_s7 = scalar_lea.vmem %s733_s24, 16 }
  0xa6   : > { %p4178_p9 = scmp.ne.s32.totalorder %s733_s24, %s4177_s7  ;;  %s4184_s2 = scalar_lea.vmem %s733_s24, 32 }
  0xa7   : > { %p4185_p13 = scmp.lt.s32.totalorder %s733_s24, %s733_s24  ;;  %p4186_p0 = scmp.lt.s32.totalorder %s4184_s2, %s4177_s7 }
  0xa8   : > { %p4180_p11 = pnand %p4178_p9, %p4574_p7 }
  0xa9   : > { %p4187_p5 = por %p4186_p0, %p4185_p13 }
  0xaa   : > { %p4181_p12 = pneg %p4180_p11 }
  0xab   : > { %3731 = dma.hbm_to_vmem [thread:$0]  (!%p4564_p6), %s5242_s13, 16, %s709_s30, [#allocation18]  }
  0xac   : > { %p4188_p1 = pnand %p4187_p5, %p4181_p12 }
  0xae   : > { %4191 = shalt.err (!%p4188_p1)
}
  0xaf   : > { %s5243_s15 = sld [smem:[#allocation54_spill]]  ;;  %s4386_s4 = smov [#allocation25]  }
  0xb0   : > { %s754_s30 = sshll.u32 %s4386_s4, 4  ;;  %s755_s30 = int_to_ptr.vmem [resolvable:$true] %s754_s30 }
  0xb1   : > { %s4203_s25 = scalar_lea.vmem %s755_s30, 16  ;;  %s4210_s22 = scalar_lea.vmem %s755_s30, 32 }
  0xb2   : > { %p4204_p3 = scmp.ne.s32.totalorder %s755_s30, %s4203_s25  ;;  %p4211_p8 = scmp.lt.s32.totalorder %s755_s30, %s755_s30 }
  0xb3   : > { %p4212_p10 = scmp.lt.s32.totalorder %s4210_s22, %s4203_s25 }
  0xb4   : > { %p4206_p2 = pnand %p4204_p3, %p4574_p7 }
  0xb5   : > { %3737 = dma.hbm_to_vmem [thread:$0]  (!%p4564_p6), %s5243_s15, 16, %s733_s24, [#allocation21]  }
  0xb6   : > { %p4207_p4 = pneg %p4206_p2  ;;  %p4213_p9 = por %p4212_p10, %p4211_p8 }
  0xb8   : > { %p4214_p11 = pnand %p4213_p9, %p4207_p4 }
  0xba   : > { %4217 = shalt.err (!%p4214_p11)
}
  0xbb   : > { %s5244_s17 = sld [smem:[#allocation56_spill]]  ;;  %s3307_s6 = sadd.s32 4294967294, %s4370_s28  }
  0xbc   : > { %s4693_s8 = sadd.s32 1, %s4370_s28   ;;  %s56_s24 = sadd.s32 1, %s4366_s27 }
  0xbd   : > { %s53_s7 = ssub.s32 %s4370_s28, %s4693_s8  ;;  %p63_p7 = scmp.ne.s32.totalorder %s4366_s27, %s4362_s26 }
  0xbe   : > { %p54_p12 = scmp.eq.s32.totalorder %s53_s7, 0  ;;  %p64_p13 = scmp.eq.s32.totalorder %s4370_s28, 0 }
  0xbf   : > { %p69_p0 = scmp.ne.s32.totalorder %s4362_s26, %s4358_s5  ;;  %p581_p5 = scmp.eq.s32.totalorder %s4548_s29, 1 }
  0xc0   : > { %s4705_s2 = scalar_select %p54_p12, %s4366_s27, %s56_s24  }
  0xc1   : > { %3743 = dma.hbm_to_vmem [thread:$0]  (!%p4564_p6), %s5244_s17, 16, %s755_s30, [#allocation24]  }
  0xc2   : > { %5245 = sst [smem:[#allocation38_spill]] %s4705_s2  ;;  %p65_p1 = por %p64_p13, %p63_p7 }
  0xc3   : > { %p5246_p3 = scmp.eq.s32.totalorder %s4548_s29, 0  ;;  %p4713_p6 = por %p581_p5, %p63_p7 }
  0xc4   : > { %p587_p4 = scmp.eq.s32.totalorder %s3307_s6, 1  ;;  %p3768_p8 = scmp.lt.s32.totalorder %s4370_s28, 2 }
  0xc5   : > { %p4709_p2 = por %p5246_p3, %p69_p0  ;;  %s783_s4 = sand.u32 1, %s4366_s27  }
  0xc6   : > { %s5248_s23 = scalar_select %p4713_p6, 1, 0 }
  0xc7   : > { %s5247_s1 = scalar_select %p4709_p2, 1, 0 }
  0xc8   : > { %p4719_p10 = por %p587_p4, %p69_p0  ;;  %s4723_s25 = sshll.u32 %s783_s4, 3 }
  0xc9   : > { %s3324_s22 = sshll.u32 %s4370_s28, 7  ;;  %s5250_s24 = sld [smem:[#allocation39_spill]] }
  0xca   : > { %s5249_s30 = scalar_select %p4719_p10, 1, 0 }
  0xcb   : > { %s787_s9 = scalar_lea.vmem [#allocation2], %s4723_s25  ;;  %p4732_p9 = pnand %p3768_p8, %p65_p1 }
  0xcc   : > { %s794_s6 = sshll.u32 %s787_s9, 4  ;;  %s5252_s14 = sld [smem:[#allocation40_spill]]  ;;  %s795_s6 = int_to_ptr.vmem [resolvable:$true] %s794_s6 }
  0xcd   : > { %s784_s3 = scalar_lea.sflag [#allocation3], %s783_s4  ;;  %p4220_p7 = pneg %p4732_p9 }
  0xcf   : > { %s4729_s7 = scalar_lea.hbm %s5250_s24, %s3324_s22  ;;  %s4223_s17 = scalar_lea.hbm %s5250_s24, 256 }
  0xd0   : > { %s4218_s10 = scalar_lea.hbm %s4729_s7, 128  ;;  %p4224_p0 = scmp.lt.s32.totalorder %s4729_s7, %s5250_s24 }
  0xd1   : > { %p4219_p11 = scmp.ne.s32.totalorder %s4729_s7, %s4218_s10  ;;  %p4225_p5 = scmp.lt.s32.totalorder %s4223_s17, %s4218_s10 }
  0xd2   : > { %s4739_s15 = scalar_lea.hbm %s5252_s14, %s3324_s22 }
  0xd3   : > { %p4221_p12 = pnand %p4220_p7, %p4219_p11  ;;  %p4226_p1 = por %p4225_p5, %p4224_p0 }
  0xd5   : > { %p4222_p13 = pneg %p4221_p12 }
  0xd7   : > { %p4227_p3 = pnand %p4226_p1, %p4222_p13 }
  0xd9   : > { %4230 = shalt.err (!%p4227_p3)
}
  0xda   : > { %s4231_s12 = scalar_lea.vmem %s795_s6, 128  ;;  %s4387_s13 = smov [#allocation2]  }
  0xdb   : > { %p4232_p4 = scmp.ne.s32.totalorder %s795_s6, %s4231_s12  ;;  %s4236_s4 = sshll.u32 %s4387_s13, 4  ;;  %s4237_s4 = int_to_ptr.vmem [resolvable:$false] %s4236_s4 }
  0xdc   : > { %s4238_s16 = scalar_lea.vmem %s4237_s4, 256  ;;  %p4239_p12 = scmp.lt.s32.totalorder %s795_s6, %s4237_s4 }
  0xdd   : > { %p4234_p8 = pnand %p4232_p4, %p4220_p7  ;;  %p4240_p10 = scmp.lt.s32.totalorder %s4238_s16, %s4231_s12 }
  0xdf   : > { %p4235_p11 = pneg %p4234_p8  ;;  %p4241_p6 = por %p4240_p10, %p4239_p12 }
  0xe1   : > { %p4242_p2 = pnand %p4241_p6, %p4235_p11 }
  0xe3   : > { %4245 = shalt.err (!%p4242_p2)
}
  0xe4   : > { %3747 = dma.hbm_to_vmem [thread:$0]  (!%p4732_p9), %s4729_s7, 128, %s795_s6, %s784_s3  }
  0xe5   : > { %s801_s17 = sand.u32 1, %s4370_s28   ;;  %s805_s27 = scalar_lea.vmem [#allocation5], %s4723_s25 }
  0xe6   : > { %s812_s2 = sshll.u32 %s805_s27, 4  ;;  %s802_s22 = scalar_lea.sflag [#allocation6], %s801_s17  ;;  %s813_s2 = int_to_ptr.vmem [resolvable:$true] %s812_s2 }
  0xe7   : > { %s4246_s10 = scalar_lea.hbm %s4739_s15, 128  ;;  %s4251_s13 = scalar_lea.hbm %s5252_s14, 256 }
  0xe8   : > { %p4247_p13 = scmp.ne.s32.totalorder %s4739_s15, %s4246_s10  ;;  %p4252_p10 = scmp.lt.s32.totalorder %s4739_s15, %s5252_s14 }
  0xe9   : > { %p4253_p0 = scmp.lt.s32.totalorder %s4251_s13, %s4246_s10 }
  0xea   : > { %p4249_p2 = pnand %p4247_p13, %p4220_p7 }
  0xeb   : > { %p4254_p5 = por %p4253_p0, %p4252_p10 }
  0xec   : > { %p4250_p6 = pneg %p4249_p2 }
  0xee   : > { %p4255_p1 = pnand %p4254_p5, %p4250_p6 }
  0xf0   : > { %4258 = shalt.err (!%p4255_p1)
}
  0xf1   : > { %s4259_s25 = scalar_lea.vmem %s813_s2, 128  ;;  %s4388_s7 = smov [#allocation5]  }
  0xf2   : > { %p4260_p3 = scmp.ne.s32.totalorder %s813_s2, %s4259_s25  ;;  %s4264_s6 = sshll.u32 %s4388_s7, 4  ;;  %s4265_s6 = int_to_ptr.vmem [resolvable:$false] %s4264_s6 }
  0xf3   : > { %s4266_s3 = scalar_lea.vmem %s4265_s6, 256  ;;  %p4267_p11 = scmp.lt.s32.totalorder %s813_s2, %s4265_s6 }
  0xf4   : > { %p4262_p4 = pnand %p4260_p3, %p4220_p7  ;;  %p4268_p12 = scmp.lt.s32.totalorder %s4266_s3, %s4259_s25 }
  0xf6   : > { %p4263_p8 = pneg %p4262_p4  ;;  %p4269_p13 = por %p4268_p12, %p4267_p11 }
  0xf8   : > { %p4270_p2 = pnand %p4269_p13, %p4263_p8 }
  0xfa   : > { %4273 = shalt.err (!%p4270_p2)
}
  0xfb   : > { %3750 = dma.hbm_to_vmem [thread:$0]  (!%p4732_p9), %s4739_s15, 128, %s813_s2, %s802_s22  }
  0xfc   : > { %p5253_p6 = scmp.ne.s32.totalorder %s5229_s0, 0 }
  0xfd   : > { %s4784_s17 = sand.u32 (!%p5253_p6), 1, %s4362_s26   ;;  %p5254_p7 = scmp.ne.s32.totalorder (!%p5253_p6), %s5247_s1, 0 }
  0xfe   : > { %821 = sbr.rel (%p5253_p6) target bundleno = 4303 (0x10cf), region = 116  ;;  %s4787_s27 = sshll.u32 (!%p5253_p6), %s4784_s17, 3 }
  0xff   : > { %s824_s10 = scalar_lea.sflag (!%p5253_p6), [#allocation3], %s4784_s17  ;;  %s827_s9 = scalar_lea.vmem (!%p5253_p6), [#allocation2], %s4787_s27 }
 0x103   : > { %4317 = dma.done.wait (%p5254_p7), %s824_s10, 128  }
 0x104   : > { %4319 = vsyncadd (%p5254_p7), %s824_s10, 4294967168  ;;  %s832_s11 = sand.u32 1, %s4548_s29   ;;  %s836_s0 = scalar_lea.vmem [#allocation5], %s4787_s27 }
 0x105   : > { %s833_s15 = scalar_lea.sflag [#allocation6], %s832_s11 }
 0x106   : > { %4321 = dma.done.wait (%p5254_p7), %s833_s15, 128  }
 0x107   : > { %4323 = vsyncadd (%p5254_p7), %s833_s15, 4294967168  ;;  %p5255_p9 = scmp.eq.s32.totalorder %s4548_s29, 0 }
 0x109   : > { %4325 = dma.done.wait (%p5255_p9), [#allocation6], 16   ;;  %p5256_p10 = pmov %p5255_p9 }
 0x10a   : > { %p5257_p0 = pmov %p5255_p9 }
 0x10b   : > { %4327 = vsyncadd (%p5256_p10), [#allocation6], 4294967280 }
 0x10c   : > { %4329 = dma.done.wait (%p5257_p0), [#allocation9], 32   ;;  %p5258_p5 = pmov %p5257_p0 }
 0x10d   : > { %p5259_p1 = pmov %p5257_p0 }
 0x10e   : > { %4331 = vsyncadd (%p5258_p5), [#allocation9], 4294967264 }
 0x10f   : > { %4333 = dma.done.wait (%p5259_p1), [#allocation12], 32   ;;  %p5260_p3 = pmov %p5257_p0 }
 0x110   : > { %p5261_p4 = pmov %p5257_p0 }
 0x111   : > { %4335 = vsyncadd (%p5260_p3), [#allocation12], 4294967264 }
 0x112   : > { %4337 = dma.done.wait (%p5261_p4), [#allocation15], 528   ;;  %p5262_p8 = pmov %p5257_p0 }
 0x113   : > { %p5263_p11 = pmov %p5257_p0 }
 0x114   : > { %4339 = vsyncadd (%p5262_p8), [#allocation15], 4294966768 }
 0x115   : > { %4341 = dma.done.wait (%p5263_p11), [#allocation18], 528   ;;  %p5264_p12 = pmov %p5257_p0 }
 0x116   : > { %p5265_p13 = pmov %p5257_p0 }
 0x117   : > { %4343 = vsyncadd (%p5264_p12), [#allocation18], 4294966768 }
 0x118   : > { %4345 = dma.done.wait (%p5265_p13), [#allocation21], 528   ;;  %p5266_p2 = pmov %p5257_p0 }
 0x119   : > { %p5267_p6 = pmov %p5257_p0 }
 0x11a   : > { %4347 = vsyncadd (%p5266_p2), [#allocation21], 4294966768 }
 0x11b   : > { %4349 = dma.done.wait (%p5267_p6), [#allocation24], 32   ;;  %p5268_p7 = pmov %p5257_p0 }
 0x11c   : > { %v4389_v0 = vmov 0.0   ;;  %vm4390_vm0 = vmmov 0   ;;  %s5269_s22 = sld [smem:[#allocation41_spill]]  ;;  %v4851_v5 = vld [vmem:[%s827_s9] sm:$0xff]  ;;  %vm981_vm1 = vcmask 261120   ;;  %vm1131_vm2 = vcmask 64512  }
 0x11d   : > { %4351 = vsyncadd (%p5268_p7), [#allocation24], 4294967264  ;;  %3470 = vmatprep.subr.mxu1 %v4389_v0  ;;  %3478 = vmatprep.mubr.msk.f32.mxu1 %vm4390_vm0, %v4389_v0  ;;  %s5270_s10 = sld [smem:[#allocation43_spill]]  ;;  %v3346_v12 = vld [vmem:[#allocation8] ss:$0 sm:$0xff]  ;;  %s4391_s13 = smov 112  }
 0x11e   : > { %3492 = vmatprep.subr.mxu0 %v4389_v0  ;;  %3494 = vmatprep.mubr.msk.f32.mxu0 %vm4390_vm0, %v4389_v0  ;;  %v3344_v15 = vld [vmem:[#allocation7] ss:$0 sm:$0xff]  ;;  %s4392_s4 = smov 120   ;;  %s4393_s16 = smov 104   ;;  %vm1803_vm3 = vcmask 130048   ;;  %vm1805_vm4 = vcmask 195584  }
 0x11f   : > { %s4394_s25 = smov 96   ;;  %s5205_s7 = smov 80   ;;  %vm2972_vm5 = vcmask 523264  }
 0x120   : > { %s5204_s6 = smov 72   ;;  %s4397_s3 = smov 88  }
 0x121   : > { %s5271_s9 = sld [smem:[#allocation45_spill]]  ;;  %s4398_s15 = smov 8  }
 0x122   : > { %v963_v1 = vld [vmem:[%s5269_s22 + $0x18] sm:$0xff]  ;;  %v962_v2 = vld [vmem:[%s5269_s22 + $0x10] sm:$0xff]  ;;  %v961_v3 = vld [vmem:[%s5269_s22 + $0x8] sm:$0xff]  ;;  %s4400_s1 = smov 24   ;;  %s5275_s11 = sld [smem:[#allocation58_spill]] }
 0x123   : > { %3471 = vmatpush3.msra.mxu1 %v963_v1  ;;  %v960_v4 = vld [vmem:[%s5269_s22] sm:$0xff]  ;;  %v968_v6 = vld [vmem:[%s5270_s10 + $0x18] sm:$0xff]  ;;  %v967_v7 = vld [vmem:[%s5270_s10 + $0x10] sm:$0xff]  ;;  %p5277_p10 = scmp.ne.s32.totalorder %s5248_s23, 0 }
 0x124   : > { %3472 = vmatprep.subr.mxu1 %v4389_v0  ;;  %v966_v8 = vld [vmem:[%s5270_s10 + $0x8] sm:$0xff]  ;;  %v965_v9 = vld [vmem:[%s5270_s10] sm:$0xff] }
 0x125   : > { %3473 = vmatpush3.msra.mxu1 %v962_v2 }
 0x126   : > { %3474 = vmatprep.subr.mxu1 %v4389_v0 }
 0x127   : > { %3475 = vmatpush3.msra.mxu1 %v961_v3 }
 0x128   : > { %3476 = vmatprep.subr.mxu1 %v4389_v0 }
 0x129   : > { %3477 = vmatpush3.msra.mxu1 %v960_v4 }
 0x12a   : > { %3479 = vmatmul.mubr.msk.f32.vlgmr.msra.gmra.mxu1 %vm981_vm1, %v4851_v5  ;;  %3481 = vmatprep.subr.mxu1 %v4389_v0 }
 0x12b   : > { %3482 = vmatpush3.msra.mxu1 %v968_v6  ;;  %3489 = vmatprep.mubr.msk.f32.mxu1 %vm4390_vm0, %v4389_v0 }
 0x12c   : > { %3483 = vmatprep.subr.mxu1 %v4389_v0 }
 0x12d   : > { %3484 = vmatpush3.msra.mxu1 %v967_v7 }
 0x12e   : > { %3485 = vmatprep.subr.mxu1 %v4389_v0 }
 0x12f   : > { %3486 = vmatpush3.msra.mxu1 %v966_v8 }
 0x130   : > { %3487 = vmatprep.subr.mxu1 %v4389_v0 }
 0x131   : > { %3488 = vmatpush3.msra.mxu1 %v965_v9 }
 0x132   : > { %3490 = vmatmul.mubr.msk.f32.vlgmr.msra.gmra.mxu1 %vm981_vm1, %v4851_v5  ;;  %3497 = vmatprep.subr.mxu1 %v4389_v0 }
 0x133   : > { %3499 = vmatprep.mubr.msk.f32.mxu1 %vm4390_vm0, %v4389_v0 }
 0x1ea   : > { %v1051_v10 = vpop.f32.mrf.mxu1 }
 0x1eb   : > { %v1052_v17 = vadd.f32 %v3344_v15, %v1051_v10  ;;  %v970_v15 = vld [vmem:[%s5271_s9] sm:$0xff] }
 0x1ec   : > { %v3480_v11 = vpop.f32.mrf.mxu1 }
 0x1f2   : > { %v1127_v13 = vpop.f32.mrf.mxu1 }
 0x1f3   : > { %v4879_v14 = vadd.f32 %v3346_v12, %v1127_v13  ;;  %v973_v12 = vld [vmem:[%s5271_s9 + $0x18] sm:$0xff]  ;;  %v972_v13 = vld [vmem:[%s5271_s9 + $0x10] sm:$0xff] }
 0x1f4   : > { %v3491_v16 = vpop.f32.mrf.mxu1 }
 0x1f5   : > { %1462 = vrot.lane.b32.xlu1 %v4879_v14, %s4391_s13  ;;  %1297 = vrot.lane.b32.xlu0 %v4879_v14, %s4392_s4 }
 0x1f6   : > { %3493 = vmatpush3.xpose.msk.msra.mxu0 %vm1131_vm2, %v4879_v14 }
 0x1f7   : > { %3502 = vmatprep.subr.mxu0 %v4389_v0 }
 0x1f9   : > { %3495 = vmatmul.mubr.msk.f32.vlgmr.msra.gmra.mxu0 %vm1131_vm2, %v1052_v17  ;;  %1460 = vrot.lane.b32.xlu1 %v1052_v17, %s4391_s13 }
 0x1fa   : > { %1295 = vrot.lane.b32.xlu0 %v1052_v17, %s4392_s4  ;;  %3504 = vmatprep.mubr.msk.f32.mxu0 %vm4390_vm0, %v4389_v0 }
 0x1fd   : > { %1625 = vrot.lane.b32.xlu1 %v1052_v17, %s4393_s16 }
 0x1fe   : > { %1627 = vrot.lane.b32.xlu0 %v4879_v14, %s4393_s16 }
 0x267   : > { %v1298_v18 = vpop.permute.xlu0 %1297  ;;  %v1463_v19 = vpop.permute.xlu1 %1462 }
 0x268   : > { %3503 = vmatpush3.xpose.msk.msra.mxu0 %vm1131_vm2, %v1298_v18 }
 0x269   : > { %3512 = vmatprep.subr.mxu0 %v4389_v0 }
 0x26b   : > { %v1461_v21 = vpop.permute.xlu1 %1460 }
 0x26c   : > { %v1296_v20 = vpop.permute.xlu0 %1295 }
 0x26d   : > { %3505 = vmatmul.mubr.msk.f32.vlgmr.msra.gmra.mxu0 %vm1131_vm2, %v1296_v20 }
 0x26e   : > { %3513 = vmatpush3.xpose.msk.msra.mxu0 %vm1131_vm2, %v1463_v19  ;;  %3514 = vmatprep.mubr.msk.f32.mxu0 %vm4390_vm0, %v4389_v0 }
 0x26f   : > { %3522 = vmatprep.subr.mxu0 %v4389_v0  ;;  %v1626_v23 = vpop.permute.xlu1 %1625 }
 0x270   : > { %v1628_v22 = vpop.permute.xlu0 %1627 }
 0x271   : > { %3515 = vmatmul.mubr.msk.f32.vlgmr.msra.gmra.mxu0 %vm1131_vm2, %v1461_v21 }
 0x272   : > { %3523 = vmatpush3.xpose.msk.msra.mxu0 %vm1131_vm2, %v1628_v22  ;;  %3524 = vmatprep.mubr.msk.f32.mxu0 %vm4390_vm0, %v4389_v0 }
 0x273   : > { %3532 = vmatprep.subr.mxu0 %v4389_v0 }
 0x275   : > { %3525 = vmatmul.mubr.msk.f32.vlgmr.msra.gmra.mxu0 %vm1131_vm2, %v1626_v23 }
 0x276   : > { %3540 = vmatprep.mubr.msk.f32.mxu0 %vm4390_vm0, %v4389_v0  ;;  %3533 = vmatpush3.msra.mxu0 %v973_v12 }
 0x277   : > { %3534 = vmatprep.subr.mxu0 %v4389_v0 }
 0x278   : > { %3535 = vmatpush3.msra.mxu0 %v972_v13 }
 0x279   : > { %3536 = vmatprep.subr.mxu0 %v4389_v0 }
 0x2b9   : > { %v1204_v24 = vpop.f32.mrf.mxu0 }
 0x2ba   : > { %v1208_v25 = vsel %vm1131_vm2, %v1204_v24, -inf }
 0x2bb   : > { %1209 = vmax.xlane.f32.xlu0 %v1208_v25  ;;  %v3496_v26 = vpop.f32.mrf.mxu0 }
 0x32d   : > { %v1369_v27 = vpop.f32.mrf.mxu0 }
 0x32e   : > { %v1373_v28 = vsel %vm1131_vm2, %v1369_v27, -inf }
 0x32f   : > { %1374 = vmax.xlane.f32.xlu1 %v1373_v28  ;;  %v3506_v29 = vpop.f32.mrf.mxu0  ;;  %v3360_v28 = vld [vmem:[#allocation10] ss:$0 sm:$0xff] }
 0x331   : > { %v1534_v30 = vpop.f32.mrf.mxu0 }
 0x332   : > { %v1538_v31 = vsel %vm1131_vm2, %v1534_v30, -inf }
 0x333   : > { %1539 = vmax.xlane.f32.xlu0 %v1538_v31  ;;  %v3516_v32 = vpop.f32.mrf.mxu0 }
 0x335   : > { %v1699_v33 = vpop.f32.mrf.mxu0 }
 0x336   : > { %v1703_v34 = vsel %vm1131_vm2, %v1699_v33, -inf }
 0x337   : > { %1704 = vmax.xlane.f32.xlu0 %v1703_v34  ;;  %v3526_v35 = vpop.f32.mrf.mxu0 }
 0x340   : > { %1219 = vrot.lane.b32.xlu1 %v4879_v14, %s4394_s25 }
 0x344   : > { %v1210_v36 = vpop.xlane.xlu0 %1209 }
 0x345   : > { %v1211_v37 = vsub.f32 %v1204_v24, %v1210_v36 }
 0x347   : > { %v1212_v38 = vmul.f32 1.442695, %v1211_v37 }
 0x349   : > { %3842 = vpow2.f32 %v1212_v38 }
 0x356   : > { %v3843_v39 = vpop.eup %3842 }
 0x357   : > { %v1214_v40 = vsel %vm1131_vm2, %v3843_v39, 0.0 }
 0x364   : > { %1215 = vadd.xlane.f32.xlu1 %v1214_v40  ;;  %v1924_v40 = vld [vmem:[#allocation17 + $0x10] sm:$0xff] }
 0x3b8   : > { %v1375_v41 = vpop.xlane.xlu1 %1374 }
 0x3b9   : > { %v1376_v42 = vsub.f32 %v1369_v27, %v1375_v41  ;;  %v1923_v41 = vld [vmem:[#allocation17 + $0x8] sm:$0xff] }
 0x3bb   : > { %v1377_v43 = vmul.f32 1.442695, %v1376_v42  ;;  %v1919_v42 = vld [vmem:[#allocation14 + $0x10] sm:$0xff] }
 0x3bc   : > { %v1220_v44 = vpop.permute.xlu1 %1219  ;;  %v1540_v45 = vpop.xlane.xlu0 %1539 }
 0x3bd   : > { %3844 = vpow2.f32 %v1377_v43  ;;  %v1541_v46 = vsub.f32 %v1534_v30, %v1540_v45  ;;  %3498 = vmatpush3.msra.mxu1 %v1220_v44  ;;  %v1922_v43 = vld [vmem:[#allocation17] sm:$0xff] }
 0x3be   : > { %3507 = vmatprep.subr.mxu1 %v4389_v0  ;;  %v959_v44 = vld [vmem:[%s836_s0] sm:$0xff]  ;;  %s5272_s0 = smov 80  }
 0x3bf   : > { %v1542_v47 = vmul.f32 1.442695, %v1541_v46  ;;  %v1918_v45 = vld [vmem:[#allocation14 + $0x8] sm:$0xff]  ;;  %v1917_v46 = vld [vmem:[#allocation14] sm:$0xff] }
 0x3c0   : > { %v1705_v48 = vpop.xlane.xlu0 %1704 }
 0x3c1   : > { %3846 = vpow2.f32 %v1542_v47  ;;  %v1706_v49 = vsub.f32 %v1699_v33, %v1705_v48 }
 0x3c3   : > { %v1707_v50 = vmul.f32 1.442695, %v1706_v49 }
 0x3c5   : > { %3848 = vpow2.f32 %v1707_v50 }
 0x3ca   : > { %v3845_v51 = vpop.eup %3844 }
 0x3cb   : > { %v1379_v52 = vsel %vm1131_vm2, %v3845_v51, 0.0 }
 0x3cc   : > { %1380 = vadd.xlane.f32.xlu0 %v1379_v52 }
 0x3ce   : > { %v3847_v53 = vpop.eup %3846 }
 0x3cf   : > { %v1544_v54 = vsel %vm1131_vm2, %v3847_v53, 0.0 }
 0x3d0   : > { %1545 = vadd.xlane.f32.xlu1 %v1544_v54 }
 0x3d2   : > { %v3849_v55 = vpop.eup %3848 }
 0x3d3   : > { %v1709_v56 = vsel %vm1131_vm2, %v3849_v55, 0.0 }
 0x3d4   : > { %1710 = vadd.xlane.f32.xlu0 %v1709_v56  ;;  %v3366_v56 = vld [vmem:[#allocation19] ss:$0 sm:$0xff] }
 0x3e1   : > { %1549 = vrot.lane.b32.xlu1 %v4879_v14, %s5205_s7  ;;  %s4401_s7 = smov [#allocation26]  }
 0x3e5   : > { %1714 = vrot.lane.b32.xlu1 %v4879_v14, %s5204_s6  ;;  %s4399_s6 = smov 16  }
 0x3ea   : > { %1384 = vrot.lane.b32.xlu0 %v4879_v14, %s4397_s3  ;;  %v971_v14 = vld [vmem:[%s5271_s9 + $0x8] sm:$0xff]  ;;  %s3078_s9 = scalar_lea.sflag [#allocation4], %s4784_s17 }
 0x3eb   : > { %3537 = vmatpush3.msra.mxu0 %v971_v14 }
 0x3ec   : > { %3538 = vmatprep.subr.mxu0 %v4389_v0 }
 0x3ed   : > { %v1216_v57 = vpop.xlane.xlu1 %1215  ;;  %3539 = vmatpush3.msra.mxu0 %v970_v15 }
 0x3ee   : > { %3850 = vrcp.f32 %v1216_v57  ;;  %3554 = vmatprep.subr.mxu0 %v4389_v0 }
 0x3fb   : > { %v3851_v58 = vpop.eup %3850 }
 0x3fc   : > { %v1218_v59 = vmul.f32 %v3851_v58, %v3843_v39  ;;  %v1925_v39 = vld [vmem:[#allocation17 + $0x18] sm:$0xff] }
 0x3fe   : > { %3500 = vmatmul.mubr.msk.f32.vlgmr.msra.gmra.mxu1 %vm1131_vm2, %v1218_v59 }
 0x3ff   : > { %3509 = vmatprep.mubr.msk.f32.mxu1 %vm4390_vm0, %v4389_v0 }
 0x455   : > { %v1381_v60 = vpop.xlane.xlu0 %1380 }
 0x456   : > { %3852 = vrcp.f32 %v1381_v60 }
 0x459   : > { %v1546_v61 = vpop.xlane.xlu1 %1545 }
 0x45a   : > { %3854 = vrcp.f32 %v1546_v61  ;;  %v3364_v61 = vld [vmem:[#allocation16] ss:$0 sm:$0xff] }
 0x45d   : > { %v1711_v62 = vpop.xlane.xlu0 %1710  ;;  %v1550_v2 = vpop.permute.xlu1 %1549 }
 0x45e   : > { %3856 = vrcp.f32 %v1711_v62 }
 0x461   : > { %v1385_v63 = vpop.permute.xlu0 %1384  ;;  %v1715_v7 = vpop.permute.xlu1 %1714 }
 0x462   : > { %3508 = vmatpush3.msra.mxu1 %v1385_v63 }
 0x463   : > { %v3853_v1 = vpop.eup %3852  ;;  %3517 = vmatprep.subr.mxu1 %v4389_v0 }
 0x464   : > { %v1383_v3 = vmul.f32 %v3853_v1, %v3845_v51  ;;  %v3362_v51 = vld [vmem:[#allocation11] ss:$0 sm:$0xff] }
 0x466   : > { %3510 = vmatmul.mubr.msk.f32.vlgmr.msra.gmra.mxu1 %vm1131_vm2, %v1383_v3 }
 0x467   : > { %v3855_v4 = vpop.eup %3854  ;;  %3518 = vmatpush3.msra.mxu1 %v1550_v2  ;;  %3519 = vmatprep.mubr.msk.f32.mxu1 %vm4390_vm0, %v4389_v0 }
 0x468   : > { %3527 = vmatprep.subr.mxu1 %v4389_v0  ;;  %v1548_v6 = vmul.f32 %v3855_v4, %v3847_v53  ;;  %v3363_v53 = vld [vmem:[#allocation13] ss:$0 sm:$0xff] }
 0x46a   : > { %3520 = vmatmul.mubr.msk.f32.vlgmr.msra.gmra.mxu1 %vm1131_vm2, %v1548_v6 }
 0x46b   : > { %v3857_v8 = vpop.eup %3856  ;;  %3528 = vmatpush3.msra.mxu1 %v1715_v7  ;;  %3529 = vmatprep.mubr.msk.f32.mxu1 %vm4390_vm0, %v4389_v0 }
 0x46c   : > { %v1713_v9 = vmul.f32 %v3857_v8, %v3849_v55  ;;  %3543 = vmatprep.subr.mxu1 %v4389_v0 }
 0x46e   : > { %3530 = vmatmul.mubr.msk.f32.vlgmr.msra.gmra.mxu1 %vm1131_vm2, %v1713_v9 }
 0x46f   : > { %3551 = vmatprep.mubr.msk.f32.mxu1 %vm4390_vm0, %v4389_v0 }
 0x4be   : > { %v1291_v10 = vpop.f32.mrf.mxu1 }
 0x4c0   : > { %v3501_v11 = vpop.f32.mrf.mxu1 }
 0x526   : > { %v1456_v16 = vpop.f32.mrf.mxu1 }
 0x527   : > { %1791 = vrot.lane.b32.xlu0 %v1456_v16, %s4398_s15 }
 0x528   : > { %v3511_v17 = vpop.f32.mrf.mxu1 }
 0x52a   : > { %v1621_v18 = vpop.f32.mrf.mxu1 }
 0x52b   : > { %1795 = vrot.lane.b32.xlu1 %v1621_v18, %s4399_s6 }
 0x52c   : > { %v3521_v19 = vpop.f32.mrf.mxu1 }
 0x52e   : > { %v1786_v20 = vpop.f32.mrf.mxu1 }
 0x52f   : > { %1799 = vrot.lane.b32.xlu0 %v1786_v20, %s4400_s1 }
 0x530   : > { %v3531_v21 = vpop.f32.mrf.mxu1 }
 0x599   : > { %v1792_v22 = vpop.permute.xlu0 %1791 }
 0x59a   : > { %v1802_v24 = vsel %vm1131_vm2, %v1291_v10, %v1792_v22 }
 0x59d   : > { %v1796_v23 = vpop.permute.xlu1 %1795 }
 0x59e   : > { %v1804_v25 = vsel %vm1803_vm3, %v1802_v24, %v1796_v23 }
 0x5a1   : > { %v1800_v26 = vpop.permute.xlu0 %1799 }
 0x5a2   : > { %v1806_v27 = vsel %vm1805_vm4, %v1804_v25, %v1800_v26 }
 0x5a3   : > { %3541 = vmatmul.mubr.msk.f32.vlgmr.msra.gmra.mxu0 %vm981_vm1, %v1806_v27 }
 0x5a4   : > { %3562 = vmatprep.mubr.msk.f32.mxu0 %vm4390_vm0, %v4389_v0  ;;  %3555 = vmatpush3.msra.mxu0 %v1925_v39 }
 0x5a5   : > { %3556 = vmatprep.subr.mxu0 %v4389_v0 }
 0x5a6   : > { %3557 = vmatpush3.msra.mxu0 %v1924_v40 }
 0x5a7   : > { %3558 = vmatprep.subr.mxu0 %v4389_v0 }
 0x5a8   : > { %3559 = vmatpush3.msra.mxu0 %v1923_v41 }
 0x5a9   : > { %3560 = vmatprep.subr.mxu0 %v4389_v0 }
 0x5aa   : > { %3561 = vmatpush3.msra.mxu0 %v1922_v43 }
 0x5ab   : > { %3563 = vmatmul.mubr.msk.f32.vlgmr.msra.gmra.mxu0 %vm981_vm1, %v959_v44  ;;  %3575 = vmatprep.subr.mxu0 %v4389_v0 }
 0x5ac   : > { %3577 = vmatprep.mubr.msk.f32.mxu0 %vm4390_vm0, %v4389_v0 }
 0x663   : > { %v1882_v29 = vpop.f32.mrf.mxu0 }
 0x664   : > { %v1883_v30 = vadd.f32 %v3360_v28, %v1882_v29 }
 0x665   : > { %v3542_v31 = vpop.f32.mrf.mxu0 }
 0x666   : > { %v1886_v32 = vadd.f32 %v1883_v30, %v4851_v5  ;;  %v1920_v5 = vld [vmem:[#allocation14 + $0x18] sm:$0xff] }
 0x667   : > { %3544 = vmatpush3.msra.mxu1 %v1920_v5 }
 0x668   : > { %v1889_v33 = vsel %vm981_vm1, %v1886_v32, 0.0  ;;  %3545 = vmatprep.subr.mxu1 %v4389_v0 }
 0x669   : > { %1890 = vadd.xlane.f32.xlu1 %v1889_v33  ;;  %3546 = vmatpush3.msra.mxu1 %v1919_v42 }
 0x66a   : > { %3547 = vmatprep.subr.mxu1 %v4389_v0 }
 0x66b   : > { %3548 = vmatpush3.msra.mxu1 %v1918_v45  ;;  %v2086_v57 = vpop.f32.mrf.mxu0 }
 0x66c   : > { %3549 = vmatprep.subr.mxu1 %v4389_v0  ;;  %v4990_v58 = vadd.f32 %v3366_v56, %v2086_v57 }
 0x66d   : > { %3550 = vmatpush3.msra.mxu1 %v1917_v46  ;;  %v3564_v59 = vpop.f32.mrf.mxu0 }
 0x66e   : > { %3565 = vmatprep.subr.mxu1 %v4389_v0  ;;  %v1929_v59 = vld [vmem:[#allocation20 + $0x10] sm:$0xff] }
 0x6f2   : > { %v1891_v34 = vpop.xlane.xlu1 %1890 }
 0x6f3   : > { %v1893_v35 = vmul.f32 0.03125, %v1891_v34 }
 0x6f5   : > { %v1894_v36 = vsub.f32 %v1886_v32, %v1893_v35 }
 0x6f7   : > { %v1895_v37 = vmul.f32 %v1894_v36, %v1894_v36 }
 0x6f9   : > { %v1896_v38 = vsel %vm981_vm1, %v1895_v37, 0.0 }
 0x6fa   : > { %1897 = vadd.xlane.f32.xlu0 %v1896_v38 }
 0x710   : > { %2255 = vrot.lane.b32.xlu0 %v4990_v58, %s4392_s4 }
 0x783   : > { %v1898_v47 = vpop.xlane.xlu0 %1897 }
 0x784   : > { %v1899_v48 = vmul.f32 0.03125, %v1898_v47 }
 0x786   : > { %v1900_v49 = vadd.f32 1e-05, %v1899_v48 }
 0x787   : > { %v2256_v60 = vpop.permute.xlu0 %2255 }
 0x788   : > { %3858 = vrsqrt.f32 %v1900_v49  ;;  %3576 = vmatpush3.xpose.msk.msra.mxu0 %vm1131_vm2, %v2256_v60  ;;  %v1928_v60 = vld [vmem:[#allocation20 + $0x8] sm:$0xff] }
 0x789   : > { %3585 = vmatprep.subr.mxu0 %v4389_v0 }
 0x795   : > { %v3859_v50 = vpop.eup %3858 }
 0x796   : > { %v1902_v52 = vmul.f32 %v3859_v50, %v1894_v36 }
 0x798   : > { %v1909_v54 = vmul.f32 %v3362_v51, %v1902_v52 }
 0x79a   : > { %v4984_v55 = vadd.f32 %v3363_v53, %v1909_v54 }
 0x79c   : > { %3552 = vmatmul.mubr.msk.f32.vlgmr.msra.gmra.mxu1 %vm981_vm1, %v4984_v55 }
 0x79d   : > { %3567 = vmatprep.mubr.msk.f32.mxu1 %vm4390_vm0, %v4389_v0  ;;  %3566 = vmatpush3.xpose.msk.msra.mxu1 %vm1131_vm2, %v4990_v58 }
 0x79e   : > { %3570 = vmatprep.subr.mxu1 %v4389_v0 }
 0x85c   : > { %v2007_v62 = vpop.f32.mrf.mxu1 }
 0x85d   : > { %v2008_v63 = vadd.f32 %v3364_v61, %v2007_v62  ;;  %v1927_v61 = vld [vmem:[#allocation20] sm:$0xff] }
 0x85e   : > { %v3553_v1 = vpop.f32.mrf.mxu1 }
 0x85f   : > { %2418 = vrot.lane.b32.xlu0 %v2008_v63, %s4391_s13  ;;  %2253 = vrot.lane.b32.xlu1 %v2008_v63, %s4392_s4  ;;  %s5276_s4 = sld [smem:[#allocation59_spill]] }
 0x860   : > { %3568 = vmatmul.mubr.msk.f32.vlgmr.msra.gmra.mxu1 %vm1131_vm2, %v2008_v63 }
 0x861   : > { %3572 = vmatprep.mubr.msk.f32.mxu1 %vm4390_vm0, %v4389_v0 }
 0x863   : > { %2583 = vrot.lane.b32.xlu0 %v2008_v63, %s4393_s16  ;;  %2420 = vrot.lane.b32.xlu1 %v4990_v58, %s4391_s13  ;;  %s5273_s13 = smov 72  }
 0x867   : > { %2585 = vrot.lane.b32.xlu1 %v4990_v58, %s4393_s16 }
 0x8d1   : > { %v2254_v2 = vpop.permute.xlu1 %2253  ;;  %v2419_v4 = vpop.permute.xlu0 %2418 }
 0x8d2   : > { %3578 = vmatmul.mubr.msk.f32.vlgmr.msra.gmra.mxu0 %vm1131_vm2, %v2254_v2 }
 0x8d3   : > { %3587 = vmatprep.mubr.msk.f32.mxu0 %vm4390_vm0, %v4389_v0 }
 0x8d5   : > { %v2421_v3 = vpop.permute.xlu1 %2420  ;;  %v2584_v7 = vpop.permute.xlu0 %2583 }
 0x8d6   : > { %3586 = vmatpush3.xpose.msk.msra.mxu0 %vm1131_vm2, %v2421_v3 }
 0x8d7   : > { %3595 = vmatprep.subr.mxu0 %v4389_v0 }
 0x8d9   : > { %3588 = vmatmul.mubr.msk.f32.vlgmr.msra.gmra.mxu0 %vm1131_vm2, %v2419_v4  ;;  %v2586_v6 = vpop.permute.xlu1 %2585 }
 0x8da   : > { %3596 = vmatpush3.xpose.msk.msra.mxu0 %vm1131_vm2, %v2586_v6  ;;  %3597 = vmatprep.mubr.msk.f32.mxu0 %vm4390_vm0, %v4389_v0 }
 0x8db   : > { %3605 = vmatprep.subr.mxu0 %v4389_v0 }
 0x8dd   : > { %3598 = vmatmul.mubr.msk.f32.vlgmr.msra.gmra.mxu0 %vm1131_vm2, %v2584_v7 }
 0x8de   : > { %3613 = vmatprep.mubr.msk.f32.mxu0 %vm4390_vm0, %v4389_v0 }
 0x920   : > { %v2162_v8 = vpop.f32.mrf.mxu1 }
 0x921   : > { %v2166_v9 = vsel %vm1131_vm2, %v2162_v8, -inf }
 0x922   : > { %2167 = vmax.xlane.f32.xlu1 %v2166_v9  ;;  %v3569_v10 = vpop.f32.mrf.mxu1 }
 0x992   : > { %v2327_v11 = vpop.f32.mrf.mxu0 }
 0x993   : > { %v2331_v12 = vsel %vm1131_vm2, %v2327_v11, -inf }
 0x994   : > { %2332 = vmax.xlane.f32.xlu0 %v2331_v12  ;;  %v3579_v13 = vpop.f32.mrf.mxu0  ;;  %v3380_v12 = vld [vmem:[#allocation22] ss:$0 sm:$0xff] }
 0x999   : > { %v2492_v14 = vpop.f32.mrf.mxu0 }
 0x99a   : > { %v2496_v15 = vsel %vm1131_vm2, %v2492_v14, -inf }
 0x99b   : > { %2497 = vmax.xlane.f32.xlu0 %v2496_v15  ;;  %v3589_v16 = vpop.f32.mrf.mxu0 }
 0x99d   : > { %v2657_v17 = vpop.f32.mrf.mxu0 }
 0x99e   : > { %v2661_v18 = vsel %vm1131_vm2, %v2657_v17, -inf }
 0x99f   : > { %v3599_v19 = vpop.f32.mrf.mxu0  ;;  %2662 = vmax.xlane.f32.xlu1 %v2661_v18 }
 0x9ab   : > { %v2168_v20 = vpop.xlane.xlu1 %2167 }
 0x9ac   : > { %v2169_v21 = vsub.f32 %v2162_v8, %v2168_v20 }
 0x9ae   : > { %v2170_v22 = vmul.f32 1.442695, %v2169_v21 }
 0x9b0   : > { %3860 = vpow2.f32 %v2170_v22  ;;  %2342 = vrot.lane.b32.xlu1 %v4990_v58, %s4397_s3  ;;  %s5274_s3 = sld [smem:[#allocation57_spill]] }
 0x9bd   : > { %v3861_v23 = vpop.eup %3860 }
 0x9be   : > { %v2172_v24 = vsel %vm1131_vm2, %v3861_v23, 0.0 }
 0x9bf   : > { %2173 = vadd.xlane.f32.xlu0 %v2172_v24  ;;  %v2874_v24 = vld [vmem:[%s5186_s18 + $0x10] sm:$0xff] }
 0x9d5   : > { %2177 = vrot.lane.b32.xlu0 %v4990_v58, %s4394_s25 }
 0xa1d   : > { %v2333_v25 = vpop.xlane.xlu0 %2332 }
 0xa1e   : > { %v2334_v26 = vsub.f32 %v2327_v11, %v2333_v25  ;;  %v2872_v25 = vld [vmem:[%s5186_s18] sm:$0xff] }
 0xa20   : > { %v2335_v27 = vmul.f32 1.442695, %v2334_v26  ;;  %v2964_v26 = vld [vmem:[%s5188_s20 + $0x38] sm:$0xff] }
 0xa22   : > { %3862 = vpow2.f32 %v2335_v27  ;;  %v2963_v27 = vld [vmem:[%s5188_s20 + $0x30] sm:$0xff] }
 0xa24   : > { %v2498_v28 = vpop.xlane.xlu0 %2497 }
 0xa25   : > { %v2499_v29 = vsub.f32 %v2492_v14, %v2498_v28  ;;  %v2962_v28 = vld [vmem:[%s5188_s20 + $0x28] sm:$0xff] }
 0xa27   : > { %v2500_v30 = vmul.f32 1.442695, %v2499_v29  ;;  %v2961_v29 = vld [vmem:[%s5188_s20 + $0x20] sm:$0xff] }
 0xa28   : > { %v2663_v31 = vpop.xlane.xlu1 %2662 }
 0xa29   : > { %3864 = vpow2.f32 %v2500_v30  ;;  %v2664_v32 = vsub.f32 %v2657_v17, %v2663_v31  ;;  %v2960_v30 = vld [vmem:[%s5188_s20 + $0x18] sm:$0xff] }
 0xa2b   : > { %v2665_v33 = vmul.f32 1.442695, %v2664_v32 }
 0xa2c   : > { %v2343_v43 = vpop.permute.xlu1 %2342 }
 0xa2d   : > { %3866 = vpow2.f32 %v2665_v33 }
 0xa2f   : > { %v3863_v34 = vpop.eup %3862 }
 0xa30   : > { %v2337_v35 = vsel %vm1131_vm2, %v3863_v34, 0.0 }
 0xa31   : > { %2338 = vadd.xlane.f32.xlu1 %v2337_v35  ;;  %v3382_v35 = vld [vmem:[#allocation23] ss:$0 sm:$0xff] }
 0xa36   : > { %v3865_v36 = vpop.eup %3864 }
 0xa37   : > { %v2502_v37 = vsel %vm1131_vm2, %v3865_v36, 0.0 }
 0xa38   : > { %2503 = vadd.xlane.f32.xlu0 %v2502_v37  ;;  %v3383_v37 = vld [vmem:[#allocation25] ss:$0 sm:$0xff] }
 0xa3a   : > { %v3867_v38 = vpop.eup %3866 }
 0xa3b   : > { %v2667_v39 = vsel %vm1131_vm2, %v3867_v38, 0.0 }
 0xa3c   : > { %2668 = vadd.xlane.f32.xlu1 %v2667_v39 }
 0xa48   : > { %v2174_v40 = vpop.xlane.xlu0 %2173 }
 0xa49   : > { %3868 = vrcp.f32 %v2174_v40  ;;  %v2959_v40 = vld [vmem:[%s5188_s20 + $0x10] sm:$0xff] }
 0xa4c   : > { %v2178_v5 = vpop.permute.xlu0 %2177 }
 0xa4d   : > { %3571 = vmatpush3.msra.mxu1 %v2178_v5  ;;  %2507 = vrot.lane.b32.xlu1 %v4990_v58, %s5272_s0  ;;  %v2958_v5 = vld [vmem:[%s5188_s20 + $0x8] sm:$0xff] }
 0xa4e   : > { %2672 = vrot.lane.b32.xlu0 %v4990_v58, %s5273_s13  ;;  %3580 = vmatprep.subr.mxu1 %v4389_v0  ;;  %v1930_v58 = vld [vmem:[#allocation20 + $0x18] sm:$0xff] }
 0xa4f   : > { %3606 = vmatpush3.msra.mxu0 %v1930_v58 }
 0xa50   : > { %3607 = vmatprep.subr.mxu0 %v4389_v0 }
 0xa51   : > { %3608 = vmatpush3.msra.mxu0 %v1929_v59 }
 0xa52   : > { %3609 = vmatprep.subr.mxu0 %v4389_v0 }
 0xa53   : > { %3610 = vmatpush3.msra.mxu0 %v1928_v60 }
 0xa54   : > { %3611 = vmatprep.subr.mxu0 %v4389_v0 }
 0xa55   : > { %3612 = vmatpush3.msra.mxu0 %v1927_v61 }
 0xa56   : > { %v3869_v41 = vpop.eup %3868  ;;  %3627 = vmatprep.subr.mxu0 %v4389_v0 }
 0xa57   : > { %v2176_v42 = vmul.f32 %v3869_v41, %v3861_v23  ;;  %v2875_v23 = vld [vmem:[%s5186_s18 + $0x18] sm:$0xff]  ;;  %v2957_v41 = vld [vmem:[%s5188_s20] sm:$0xff] }
 0xa59   : > { %3573 = vmatmul.mubr.msk.f32.vlgmr.msra.gmra.mxu1 %vm1131_vm2, %v2176_v42  ;;  %v3384_v42 = vld [vmem:[%s5187_s19] ss:$0 sm:$0xff] }
 0xa5a   : > { %3581 = vmatpush3.msra.mxu1 %v2343_v43  ;;  %3582 = vmatprep.mubr.msk.f32.mxu1 %vm4390_vm0, %v4389_v0 }
 0xa5b   : > { %3590 = vmatprep.subr.mxu1 %v4389_v0 }
 0xaba   : > { %v2339_v44 = vpop.xlane.xlu1 %2338 }
 0xabb   : > { %3870 = vrcp.f32 %v2339_v44 }
 0xac1   : > { %v2504_v45 = vpop.xlane.xlu0 %2503 }
 0xac2   : > { %3872 = vrcp.f32 %v2504_v45 }
 0xac5   : > { %v2669_v46 = vpop.xlane.xlu1 %2668  ;;  %v2673_v52 = vpop.permute.xlu0 %2672 }
 0xac6   : > { %3874 = vrcp.f32 %v2669_v46 }
 0xac8   : > { %v3871_v47 = vpop.eup %3870 }
 0xac9   : > { %v2508_v48 = vpop.permute.xlu1 %2507  ;;  %v2341_v49 = vmul.f32 %v3871_v47, %v3863_v34  ;;  %v3386_v47 = vld [vmem:[%s5189_s21] ss:$0 sm:$0xff] }
 0xacb   : > { %3583 = vmatmul.mubr.msk.f32.vlgmr.msra.gmra.mxu1 %vm1131_vm2, %v2341_v49 }
 0xacc   : > { %3591 = vmatpush3.msra.mxu1 %v2508_v48  ;;  %3592 = vmatprep.mubr.msk.f32.mxu1 %vm4390_vm0, %v4389_v0 }
 0xacd   : > { %3600 = vmatprep.subr.mxu1 %v4389_v0 }
 0xacf   : > { %v3873_v50 = vpop.eup %3872 }
 0xad0   : > { %v2506_v51 = vmul.f32 %v3873_v50, %v3865_v36 }
 0xad2   : > { %3593 = vmatmul.mubr.msk.f32.vlgmr.msra.gmra.mxu1 %vm1131_vm2, %v2506_v51 }
 0xad3   : > { %v3875_v53 = vpop.eup %3874  ;;  %3601 = vmatpush3.msra.mxu1 %v2673_v52  ;;  %3602 = vmatprep.mubr.msk.f32.mxu1 %vm4390_vm0, %v4389_v0 }
 0xad4   : > { %v2671_v54 = vmul.f32 %v3875_v53, %v3867_v38  ;;  %3616 = vmatprep.subr.mxu1 %v4389_v0 }
 0xad6   : > { %3603 = vmatmul.mubr.msk.f32.vlgmr.msra.gmra.mxu1 %vm1131_vm2, %v2671_v54 }
 0xad7   : > { %3624 = vmatprep.mubr.msk.f32.mxu1 %vm4390_vm0, %v4389_v0  ;;  %3617 = vmatpush3.msra.mxu1 %v2875_v23 }
 0xad8   : > { %3618 = vmatprep.subr.mxu1 %v4389_v0 }
 0xad9   : > { %3619 = vmatpush3.msra.mxu1 %v2874_v24 }
 0xada   : > { %3620 = vmatprep.subr.mxu1 %v4389_v0 }
 0xb19   : > { %v2249_v56 = vpop.f32.mrf.mxu1 }
 0xb1b   : > { %v3574_v57 = vpop.f32.mrf.mxu1 }
 0xb8b   : > { %v2414_v62 = vpop.f32.mrf.mxu1 }
 0xb8c   : > { %2749 = vrot.lane.b32.xlu1 %v2414_v62, %s4398_s15  ;;  %v3388_v62 = vld [vmem:[%s5274_s3] ss:$0 sm:$0xff]  ;;  %s3391_s15 = sshll.u32 %s4548_s29, 7  ;;  %s4278_s3 = sshll.u32 %s4401_s7, 4  ;;  %s4279_s3 = int_to_ptr.vmem [resolvable:$false] %s4278_s3 }
 0xb8d   : > { %v3584_v63 = vpop.f32.mrf.mxu1  ;;  %s3089_s16 = scalar_lea.hbm %s5276_s4, %s3391_s15  ;;  %s4280_s29 = scalar_lea.vmem %s4279_s3, 256 }
 0xb92   : > { %v2579_v1 = vpop.f32.mrf.mxu1 }
 0xb93   : > { %2753 = vrot.lane.b32.xlu0 %v2579_v1, %s4399_s6  ;;  %v3389_v1 = vld [vmem:[%s5275_s11] ss:$0 sm:$0xff]  ;;  %s957_s6 = scalar_lea.vmem [#allocation26], %s4787_s27 }
 0xb94   : > { %v3594_v2 = vpop.f32.mrf.mxu1 }
 0xb96   : > { %v2744_v3 = vpop.f32.mrf.mxu1 }
 0xb97   : > { %2757 = vrot.lane.b32.xlu1 %v2744_v3, %s4400_s1  ;;  %s3091_s1 = sshll.u32 %s957_s6, 4  ;;  %s3092_s1 = int_to_ptr.vmem [resolvable:$true] %s3091_s1 }
 0xb98   : > { %v3604_v4 = vpop.f32.mrf.mxu1  ;;  %s4274_s25 = scalar_lea.vmem %s3092_s1, 128  ;;  %p4281_p1 = scmp.lt.s32.totalorder %s3092_s1, %s4279_s3 }
 0xb99   : > { %p4275_p9 = scmp.ne.s32.totalorder %s3092_s1, %s4274_s25  ;;  %p4282_p3 = scmp.lt.s32.totalorder %s4280_s29, %s4274_s25 }
 0xb9b   : > { %p4276_p0 = pnand %p4275_p9, %p5277_p10  ;;  %p4283_p4 = por %p4282_p3, %p4281_p1 }
 0xb9d   : > { %p4277_p5 = pneg %p4276_p0 }
 0xb9f   : > { %p4284_p8 = pnand %p4283_p4, %p4277_p5 }
 0xbfe   : > { %v2750_v6 = vpop.permute.xlu1 %2749 }
 0xbff   : > { %v2760_v8 = vsel %vm1131_vm2, %v2249_v56, %v2750_v6 }
 0xc05   : > { %v2754_v7 = vpop.permute.xlu0 %2753 }
 0xc06   : > { %v2761_v9 = vsel %vm1803_vm3, %v2760_v8, %v2754_v7 }
 0xc09   : > { %v2758_v10 = vpop.permute.xlu1 %2757 }
 0xc0a   : > { %v2762_v11 = vsel %vm1805_vm4, %v2761_v9, %v2758_v10 }
 0xc0b   : > { %3614 = vmatmul.mubr.msk.f32.vlgmr.msra.gmra.mxu0 %vm981_vm1, %v2762_v11 }
 0xc0c   : > { %3643 = vmatprep.mubr.msk.f32.mxu0 %vm4390_vm0, %v4389_v0  ;;  %3628 = vmatpush3.msra.mxu0 %v2964_v26 }
 0xc0d   : > { %3629 = vmatprep.subr.mxu0 %v4389_v0 }
 0xc0e   : > { %3630 = vmatpush3.msra.mxu0 %v2963_v27 }
 0xc0f   : > { %3631 = vmatprep.subr.mxu0 %v4389_v0 }
 0xc10   : > { %3632 = vmatpush3.msra.mxu0 %v2962_v28 }
 0xc11   : > { %3633 = vmatprep.subr.mxu0 %v4389_v0 }
 0xc12   : > { %3634 = vmatpush3.msra.mxu0 %v2961_v29 }
 0xc13   : > { %3635 = vmatprep.subr.mxu0 %v4389_v0 }
 0xc14   : > { %3636 = vmatpush3.msra.mxu0 %v2960_v30 }
 0xc15   : > { %3637 = vmatprep.subr.mxu0 %v4389_v0 }
 0xc16   : > { %3638 = vmatpush3.msra.mxu0 %v2959_v40 }
 0xc17   : > { %3639 = vmatprep.subr.mxu0 %v4389_v0 }
 0xc18   : > { %3640 = vmatpush3.msra.mxu0 %v2958_v5 }
 0xc19   : > { %3641 = vmatprep.subr.mxu0 %v4389_v0 }
 0xc1a   : > { %3642 = vmatpush3.msra.mxu0 %v2957_v41 }
 0xccb   : > { %v2838_v13 = vpop.f32.mrf.mxu0 }
 0xccc   : > { %v2839_v14 = vadd.f32 %v3380_v12, %v2838_v13 }
 0xccd   : > { %v3615_v15 = vpop.f32.mrf.mxu0 }
 0xcce   : > { %v2842_v16 = vadd.f32 %v2839_v14, %v4984_v55  ;;  %v2873_v55 = vld [vmem:[%s5186_s18 + $0x8] sm:$0xff] }
 0xccf   : > { %3621 = vmatpush3.msra.mxu1 %v2873_v55 }
 0xcd0   : > { %v2845_v17 = vsel %vm981_vm1, %v2842_v16, 0.0  ;;  %3622 = vmatprep.subr.mxu1 %v4389_v0 }
 0xcd1   : > { %2846 = vadd.xlane.f32.xlu0 %v2845_v17  ;;  %3623 = vmatpush3.msra.mxu1 %v2872_v25 }
 0xd5a   : > { %v2847_v18 = vpop.xlane.xlu0 %2846 }
 0xd5b   : > { %v2848_v19 = vmul.f32 0.03125, %v2847_v18 }
 0xd5d   : > { %v2849_v20 = vsub.f32 %v2842_v16, %v2848_v19 }
 0xd5f   : > { %v2850_v21 = vmul.f32 %v2849_v20, %v2849_v20 }
 0xd61   : > { %v2851_v22 = vsel %vm981_vm1, %v2850_v21, 0.0 }
 0xd62   : > { %2852 = vadd.xlane.f32.xlu1 %v2851_v22 }
 0xdeb   : > { %v2853_v31 = vpop.xlane.xlu1 %2852 }
 0xdec   : > { %v2854_v32 = vmul.f32 0.03125, %v2853_v31 }
 0xdee   : > { %v2855_v33 = vadd.f32 1e-05, %v2854_v32 }
 0xdf0   : > { %3876 = vrsqrt.f32 %v2855_v33 }
 0xdfd   : > { %v3877_v34 = vpop.eup %3876 }
 0xdfe   : > { %v2857_v36 = vmul.f32 %v3877_v34, %v2849_v20 }
 0xe00   : > { %v2864_v38 = vmul.f32 %v3382_v35, %v2857_v36 }
 0xe02   : > { %v2871_v39 = vadd.f32 %v3383_v37, %v2864_v38 }
 0xe04   : > { %3625 = vmatmul.mubr.msk.f32.vlgmr.msra.gmra.mxu1 %vm981_vm1, %v2871_v39 }
 0xec4   : > { %v2952_v43 = vpop.f32.mrf.mxu1 }
 0xec5   : > { %v2953_v44 = vadd.f32 %v3384_v42, %v2952_v43 }
 0xec6   : > { %v3626_v45 = vpop.f32.mrf.mxu1 }
 0xec7   : > { %v2956_v46 = vmax.f32 %v2953_v44, 0.0 }
 0xec9   : > { %3644 = vmatmul.mubr.msk.f32.vlgmr.msra.gmra.mxu0 %vm2972_vm5, %v2956_v46 }
 0xf89   : > { %v3042_v48 = vpop.f32.mrf.mxu0 }
 0xf8a   : > { %v3043_v49 = vadd.f32 %v3386_v47, %v3042_v48 }
 0xf8b   : > { %v3645_v50 = vpop.f32.mrf.mxu0 }
 0xf8c   : > { %v3046_v51 = vadd.f32 %v3043_v49, %v2871_v39 }
 0xf8e   : > { %v3049_v0 = vsel %vm981_vm1, %v3046_v51, 0.0 }
 0xf8f   : > { %3050 = vadd.xlane.f32.xlu0 %v3049_v0 }
0x1018   : > { %v3051_v52 = vpop.xlane.xlu0 %3050 }
0x1019   : > { %v3052_v53 = vmul.f32 0.03125, %v3051_v52 }
0x101b   : > { %v3053_v54 = vsub.f32 %v3046_v51, %v3052_v53 }
0x101d   : > { %v3054_v56 = vmul.f32 %v3053_v54, %v3053_v54 }
0x101f   : > { %v3055_v57 = vsel %vm981_vm1, %v3054_v56, 0.0 }
0x1020   : > { %3056 = vadd.xlane.f32.xlu0 %v3055_v57 }
0x10a9   : > { %v3057_v58 = vpop.xlane.xlu0 %3056 }
0x10aa   : > { %v3058_v59 = vmul.f32 0.03125, %v3057_v58 }
0x10ac   : > { %v3059_v60 = vadd.f32 1e-05, %v3058_v59 }
0x10ae   : > { %3878 = vrsqrt.f32 %v3059_v60 }
0x10bb   : > { %v3879_v61 = vpop.eup %3878 }
0x10bc   : > { %v3061_v63 = vmul.f32 %v3879_v61, %v3053_v54 }
0x10be   : > { %v3068_v2 = vmul.f32 %v3388_v62, %v3061_v63 }
0x10c0   : > { %v3075_v3 = vadd.f32 %v3389_v1, %v3068_v2 }
0x10c2   : > { %3076 = vst.msk [vmem:[%s957_s6] sm:$0xff] %vm981_vm1, %v3075_v3 }
0x10c3   : > { %4287 = shalt.err (!%p4284_p8)
}
0x10c4   : > { %s4288_s27 = scalar_lea.hbm %s3089_s16, 128  ;;  %s4292_s12 = scalar_lea.hbm %s5276_s4, 256 }
0x10c5   : > { %p4289_p11 = scmp.ne.s32.totalorder %s3089_s16, %s4288_s27  ;;  %p4293_p2 = scmp.lt.s32.totalorder %s3089_s16, %s5276_s4 }
0x10c6   : > { %p4294_p6 = scmp.lt.s32.totalorder %s4292_s12, %s4288_s27 }
0x10c7   : > { %p4290_p12 = pnand %p4289_p11, %p5277_p10 }
0x10c8   : > { %p4295_p7 = por %p4294_p6, %p4293_p2 }
0x10c9   : > { %p4291_p13 = pneg %p4290_p12 }
0x10cb   : > { %p4296_p9 = pnand %p4295_p7, %p4291_p13 }
0x10cd   : > { %4299 = shalt.err (!%p4296_p9)
}
0x10ce   : > { %3702 = dma.vmem_to_hbm [thread:$0]  (%p5277_p10), %s3092_s1, 128, %s3089_s16, %s3078_s9  }
0x10cf PF: > { %s3103_s6 = sand.u32 1, %s4358_s5   ;;  %p5278_p0 = scmp.ne.s32.totalorder %s5249_s30, 0 }
0x10d0   : > { %p5279_p5 = scmp.ge.s32.totalorder %s4370_s28, 2  ;;  %s3104_s0 = scalar_lea.sflag [#allocation4], %s3103_s6 }
0x10d2   : > { %p3752_p1 = pnand %p5279_p5, %p5278_p0 }
0x10d4   : > { %p3753_p3 = pneg %p3752_p1 }
0x10d6   : > { %4353 = dma.done.wait (%p3753_p3), %s3104_s0, 128  }
0x10d7   : > { %4355 = vsyncadd (%p3753_p3), %s3104_s0, 4294967168  ;;  %s5280_s13 = sld [smem:[#allocation37_spill]]  ;;  %p46_p4 = scmp.ge.s32.totalorder %s4693_s8, 4  }
0x10d8   : > { %s5281_s27 = sld [smem:[#allocation38_spill]]  ;;  %s5282_s5 = smov %s4362_s26 }
0x10d9   : > { %s5284_s28 = smov %s4693_s8  ;;  %48 = sbr.rel (!%p46_p4) target bundleno = 35 (0x23), region = 226 }
0x10dd   : > { %s5283_s26 = smov %s5280_s13 }
0x10de   :  { %3109 = vsyncpa [#allocation3], 1 }
0x10df   :  { %3111 = vsyncpa [#allocation3 + $0x1], 1 }
0x10e0   :  { %3112 = vsyncpa [#allocation6], 1 }
0x10e1   :  { %3114 = vsyncpa [#allocation6 + $0x1], 1 }
0x10e2   :  { %3115 = vsyncpa [#allocation9], 1 }
0x10e3   :  { %3116 = vsyncpa [#allocation12], 1 }
0x10e4   :  { %3117 = vsyncpa [#allocation15], 1 }
0x10e5   :  { %3118 = vsyncpa [#allocation18], 1 }
0x10e6   :  { %3119 = vsyncpa [#allocation21], 1 }
0x10e7   :  { %3120 = vsyncpa [#allocation24], 1 }
0x10e8   :  { %3121 = vsyncpa [#allocation4], 1 }
0x10e9   :  { %3123 = vsyncpa [#allocation4 + $0x1], 1 }

</bundles_post_ra>
